<compile_context>
chip_gen: v6e
topology: v6e:2x2x1
jax: 0.10.0
libtpu: 0.0.40
codegen_flags: <defaults>
</compile_context>

<pallas_src>
import functools

import jax
import jax.numpy as jnp
from jax.experimental import pallas as pl
from jax.experimental.pallas import tpu as pltpu

EPS = 1e-5
LANES = 128


def _round_up(x, m):
    return (x + m - 1) // m * m


# ------------------------------------------------------------------ kernels ---

def _make_conv_kernel(k2, Ho, Wo):
    """Fused im2col + MXU matmul + per-channel partial BN stats (one image).

    x_ref : (Hq, Wq, Cin2) f32   pre-padded activation of one batch element
    w_ref : (k2*k2, Cin2, Cpad) bf16   filter taps, Cout zero-padded to 128 lanes
    o_ref : (Ho*Wo, Cpad) f32    raw conv output (lane dense)
    sum_ref, sq_ref : (1, Cpad)  per-image partial sum / sum-of-squares
    """
    def kernel(x_ref, w_ref, o_ref, sum_ref, sq_ref):
        x = x_ref[...]
        cin = x.shape[-1]
        cpad = o_ref.shape[-1]
        acc = jnp.zeros((Ho * Wo, cpad), jnp.float32)
        for a in range(k2):                       # static, fully unrolled taps
            for b in range(k2):
                tap = x[a:a + Ho, b:b + Wo, :].reshape(Ho * Wo, cin)
                acc = acc + jnp.dot(tap.astype(jnp.bfloat16),
                                    w_ref[a * k2 + b],
                                    preferred_element_type=jnp.float32)
        o_ref[...] = acc
        sum_ref[...] = jnp.sum(acc, axis=0, keepdims=True)
        sq_ref[...] = jnp.sum(acc * acc, axis=0, keepdims=True)
    return kernel


def _make_bn_kernel(relu, residual_mode):
    """y = x*scale + shift (+ residual | + residual*rscale + rshift) (+ ReLU)."""
    def finish(y, o_ref):
        if relu:
            y = jnp.maximum(y, 0.0)
        o_ref[...] = y.astype(o_ref.dtype)

    if residual_mode == "bn":
        def kernel(x_ref, s_ref, b_ref, r_ref, rs_ref, rb_ref, o_ref):
            y = (x_ref[...] * s_ref[...] + b_ref[...]
                 + r_ref[...] * rs_ref[...] + rb_ref[...])
            finish(y, o_ref)
    elif residual_mode == "raw":
        def kernel(x_ref, s_ref, b_ref, r_ref, o_ref):
            y = x_ref[...] * s_ref[...] + b_ref[...] + r_ref[...]
            finish(y, o_ref)
    else:
        def kernel(x_ref, s_ref, b_ref, o_ref):
            y = x_ref[...] * s_ref[...] + b_ref[...]
            finish(y, o_ref)
    return kernel


# ---------------------------------------------------------------- wrappers ---

def conv_bn_stats(x, w, Ho, Wo):
    """x: (N, Hq, Wq, Cin2) f32 (spatially pre-padded); w: (k2*k2, Cin2, Cpad) bf16.

    Returns conv output (N, Ho*Wo, Cpad) f32 and per-image partial BN stats
    (N, 1, Cpad) so the grid axis can be 'parallel' (megacore-safe on v7x).
    """
    N, Hq, Wq, Cin2 = x.shape
    T, _, Cpad = w.shape
    k2 = int(round(T ** 0.5))
    flops = 2 * N * Ho * Wo * T * Cin2 * Cpad
    bytes_accessed = x.size * 4 + w.size * 2 + N * Ho * Wo * Cpad * 4
    return pl.pallas_call(
        _make_conv_kernel(k2, Ho, Wo),
        out_shape=(jax.ShapeDtypeStruct((N, Ho * Wo, Cpad), jnp.float32),
                   jax.ShapeDtypeStruct((N, 1, Cpad), jnp.float32),
                   jax.ShapeDtypeStruct((N, 1, Cpad), jnp.float32)),
        grid=(N,),
        in_specs=[pl.BlockSpec((None, Hq, Wq, Cin2), lambda n: (n, 0, 0, 0)),
                  pl.BlockSpec((T, Cin2, Cpad), lambda n: (0, 0, 0))],
        out_specs=(pl.BlockSpec((None, Ho * Wo, Cpad), lambda n: (n, 0, 0)),
                   pl.BlockSpec((None, 1, Cpad), lambda n: (n, 0, 0)),
                   pl.BlockSpec((None, 1, Cpad), lambda n: (n, 0, 0))),
        compiler_params=pltpu.CompilerParams(
            dimension_semantics=("parallel",),
            vmem_limit_bytes=32 * 1024 * 1024),
        cost_estimate=pl.CostEstimate(flops=flops, transcendentals=0,
                                      bytes_accessed=bytes_accessed),
    )(x, w)


def bn_apply(x, scale, shift, *, relu, residual=None, res_scale=None,
             res_shift=None, out_dtype=jnp.float32):
    """Fused BN-apply (+ optional shortcut-BN + residual) (+ ReLU), lane dense."""
    M, C = x.shape
    tm = min(M, 512)                 # large row tiles; ragged tail is masked
    row = pl.BlockSpec((tm, C), lambda i: (i, 0))
    vec = pl.BlockSpec((1, C), lambda i: (0, 0))
    args = [x, scale, shift]
    in_specs = [row, vec, vec]
    mode = None
    if residual is not None:
        args.append(residual)
        in_specs.append(row)
        mode = "raw"
        if res_scale is not None:
            args += [res_scale, res_shift]
            in_specs += [vec, vec]
            mode = "bn"
    return pl.pallas_call(
        _make_bn_kernel(relu, mode),
        out_shape=jax.ShapeDtypeStruct((M, C), out_dtype),
        grid=(pl.cdiv(M, tm),),
        in_specs=in_specs,
        out_specs=row,
        compiler_params=pltpu.CompilerParams(dimension_semantics=("parallel",)),
    )(*args)


# ------------------------------------------------------------------ JAX glue ---

def _pad_channels(v, c):
    return jnp.pad(v, (0, c - v.shape[0]))


def bn_coeffs(psum, psq, count, gamma, beta):
    """scale/shift so that BN(x) = x*scale + shift (training-mode batch stats)."""
    s = jnp.sum(psum, axis=(0, 1))
    q = jnp.sum(psq, axis=(0, 1))
    mean = s / count
    # TODO(synk): single-pass E[x^2]-E[x]^2 variance; a two-pass (mean-subtracted)
    # reduction is numerically safer when |mean| >> std.
    var = jnp.maximum(q / count - mean * mean, 0.0)
    inv = jax.lax.rsqrt(var + EPS)
    scale = gamma * inv
    shift = beta - mean * scale
    return scale.reshape(1, -1), shift.reshape(1, -1)


def space_to_depth(xp, s):
    """(N, H, W, C) -> (N, ceil(H/s), ceil(W/s), s*s*C) phase stacking."""
    if s == 1:
        return xp
    N, H, W, C = xp.shape
    hpad, wpad = -H % s, -W % s
    if hpad or wpad:
        xp = jnp.pad(xp, ((0, 0), (0, hpad), (0, wpad), (0, 0)))
    N, H, W, C = xp.shape
    xr = xp.reshape(N, H // s, s, W // s, s, C)
    return xr.transpose(0, 1, 3, 2, 4, 5).reshape(N, H // s, W // s, s * s * C)


def conv_weight(w_oihw, stride, cout_pad, cin_pad=None):
    """(Cout, Cin, k, k) -> (k2*k2, Cin2(padded), Cpad) bf16 tap matrix matching
    space_to_depth's phase/channel ordering.  Zero columns/rows pad to 128 lanes."""
    Cout, Cin, k, _ = w_oihw.shape
    s = stride
    k2 = (k - 1) // s + 1
    w = jnp.transpose(w_oihw, (2, 3, 1, 0)).astype(jnp.float32)     # (k,k,Cin,Cout)
    if s > 1:
        wz = jnp.zeros((k2 * s, k2 * s, Cin, Cout), jnp.float32).at[:k, :k].set(w)
        w = wz.reshape(k2, s, k2, s, Cin, Cout).transpose(0, 2, 1, 3, 4, 5)
    w = w.reshape(k2 * k2, -1, Cout)
    cin2 = w.shape[1]
    cin_pad = cin2 if cin_pad is None else cin_pad
    w = jnp.pad(w, ((0, 0), (0, cin_pad - cin2), (0, cout_pad - Cout)))
    return w.astype(jnp.bfloat16)


@functools.partial(jax.jit, static_argnames=("stride",))
def basic_block_forward(x_nchw, params, stride):
    x = jnp.transpose(x_nchw, (0, 2, 3, 1)).astype(jnp.float32)     # NHWC
    N, H, W, Cin = x.shape
    planes = params['w1'].shape[0]
    Cpad = _round_up(planes, LANES)
    Ho = (H + 2 - 3) // stride + 1
    Wo = (W + 2 - 3) // stride + 1
    M = N * Ho * Wo

    g = lambda name: _pad_channels(params[name], Cpad)

    # conv1 (3x3, stride, pad=1) -> bn1 -> relu
    xq = space_to_depth(jnp.pad(x, ((0, 0), (1, 1), (1, 1), (0, 0))), stride)
    c1, s1, q1 = conv_bn_stats(xq, conv_weight(params['w1'], stride, Cpad), Ho, Wo)
    sc1, sh1 = bn_coeffs(s1, q1, M, g('g1'), g('b1'))
    o1 = bn_apply(c1.reshape(M, Cpad), sc1, sh1, relu=True)

    # conv2 (3x3, stride 1, pad=1) over the 128-lane-padded activation
    o1p = jnp.pad(o1.reshape(N, Ho, Wo, Cpad), ((0, 0), (1, 1), (1, 1), (0, 0)))
    c2, s2, q2 = conv_bn_stats(
        o1p, conv_weight(params['w2'], 1, Cpad, cin_pad=Cpad), Ho, Wo)
    sc2, sh2 = bn_coeffs(s2, q2, M, g('g2'), g('b2'))

    # shortcut branch, fused into the final BN + residual + ReLU kernel
    if stride != 1 or Cin != planes:
        xs = x[:, ::stride, ::stride, :]                # 1x1 stride-s conv input
        csc, ssc, qsc = conv_bn_stats(xs, conv_weight(params['wsc'], 1, Cpad), Ho, Wo)
        scs, shs = bn_coeffs(ssc, qsc, M, g('gsc'), g('bsc'))
        out = bn_apply(c2.reshape(M, Cpad), sc2, sh2, relu=True,
                       residual=csc.reshape(M, Cpad), res_scale=scs, res_shift=shs)
    else:
        xres = jnp.pad(x, ((0, 0), (0, 0), (0, 0), (0, Cpad - Cin))).reshape(M, Cpad)
        out = bn_apply(c2.reshape(M, Cpad), sc2, sh2, relu=True, residual=xres)

    out = out.reshape(N, Ho, Wo, Cpad)[..., :planes]
    return jnp.transpose(out, (0, 3, 1, 2))                          # back to NCHW


# --------------------------------------------------------------- reference ---

def reference_forward(x_nchw, params, stride):
    def conv(x, w, s, pad):
        return jax.lax.conv_general_dilated(
            x, w, (s, s), [(pad, pad), (pad, pad)],
            dimension_numbers=('NCHW', 'OIHW', 'NCHW'),
            precision=jax.lax.Precision.HIGHEST)

    def bn(x, g, b):
        mean = x.mean(axis=(0, 2, 3), keepdims=True)
        var = x.var(axis=(0, 2, 3), keepdims=True)
        xh = (x - mean) / jnp.sqrt(var + EPS)
        return xh * g.reshape(1, -1, 1, 1) + b.reshape(1, -1, 1, 1)

    planes = params['w1'].shape[0]
    in_planes = x_nchw.shape[1]
    out = jax.nn.relu(bn(conv(x_nchw, params['w1'], stride, 1), params['g1'], params['b1']))
    out = bn(conv(out, params['w2'], 1, 1), params['g2'], params['b2'])
    if stride != 1 or in_planes != planes:
        sc = bn(conv(x_nchw, params['wsc'], stride, 0), params['gsc'], params['bsc'])
    else:
        sc = x_nchw
    return jax.nn.relu(out + sc)


def init_params(key, in_planes, planes, stride):
    k1, k2, k3 = jax.random.split(key, 3)
    p = {
        'w1': jax.random.normal(k1, (planes, in_planes, 3, 3), jnp.float32) * 0.1,
        'g1': jnp.ones((planes,), jnp.float32),
        'b1': jnp.zeros((planes,), jnp.float32),
        'w2': jax.random.normal(k2, (planes, planes, 3, 3), jnp.float32) * 0.1,
        'g2': jnp.ones((planes,), jnp.float32),
        'b2': jnp.zeros((planes,), jnp.float32),
    }
    if stride != 1 or in_planes != planes:
        p['wsc'] = jax.random.normal(k3, (planes, in_planes, 1, 1), jnp.float32) * 0.1
        p['gsc'] = jnp.ones((planes,), jnp.float32)
        p['bsc'] = jnp.zeros((planes,), jnp.float32)
    return p


if __name__ == "__main__":
    key = jax.random.PRNGKey(0)
    kx, kp1, kp2 = jax.random.split(key, 3)

    # tolerance covers bf16 MXU matmuls (f32 accumulation) vs the f32 HIGHEST reference
    TOL = 2e-2

    # Case 1: projection shortcut (stride=2, 4 -> 8 channels), x NCHW (2, 4, 16, 16)
    x1 = jax.random.normal(kx, (2, 4, 16, 16), jnp.float32)
    params1 = init_params(kp1, 4, 8, 2)
    out1 = jax.block_until_ready(basic_block_forward(x1, params1, 2))
    ref1 = reference_forward(x1, params1, 2)
    assert out1.shape == (2, 8, 8, 8), out1.shape
    assert jnp.allclose(out1, ref1, rtol=TOL, atol=TOL), float(jnp.abs(out1 - ref1).max())

    # Case 2: identity shortcut (stride=1, same channels), x NCHW (2, 8, 16, 16)
    x2 = jax.random.normal(kx, (2, 8, 16, 16), jnp.float32)
    params2 = init_params(kp2, 8, 8, 1)
    out2 = jax.block_until_ready(basic_block_forward(x2, params2, 1))
    ref2 = reference_forward(x2, params2, 1)
    assert out2.shape == (2, 8, 16, 16), out2.shape
    assert jnp.allclose(out2, ref2, rtol=TOL, atol=TOL), float(jnp.abs(out2 - ref2).max())

    print("KERNEL_OK")
</pallas_src>

<mosaic_0001>
module attributes {stable_mosaic.version = 11 : i64} {
  func.func @kernel(%arg0: i32, %arg1: memref<128x128xf32, #tpu.memory_space<vmem>>, %arg2: memref<1x128xf32, #tpu.memory_space<vmem>>, %arg3: memref<1x128xf32, #tpu.memory_space<vmem>>, %arg4: memref<128x128xf32, #tpu.memory_space<vmem>>) attributes {dimension_semantics = [#tpu.dimension_semantics<parallel>], iteration_bounds = array<i64: 1>, scalar_prefetch = 0 : i64, scratch_operands = 0 : i64, tpu.core_type = #tpu.core_type<tc>, window_params = [{transform_indices = @transform_0, window_bounds = array<i64: 128, 128>}, {pipeline_mode = #tpu.pipeline_mode<synchronous>, transform_indices = @transform_1, window_bounds = array<i64: 1, 128>}, {pipeline_mode = #tpu.pipeline_mode<synchronous>, transform_indices = @transform_2, window_bounds = array<i64: 1, 128>}, {transform_indices = @transform_3, window_bounds = array<i64: 128, 128>}]} {
    %c0 = arith.constant 0 : index
    %c0_0 = arith.constant 0 : index
    %0 = vector.load %arg1[%c0, %c0_0] : memref<128x128xf32, #tpu.memory_space<vmem>>, vector<128x128xf32>
    %c0_1 = arith.constant 0 : index
    %c0_2 = arith.constant 0 : index
    %1 = vector.load %arg2[%c0_1, %c0_2] : memref<1x128xf32, #tpu.memory_space<vmem>>, vector<1x128xf32>
    %2 = vector.broadcast %1 : vector<1x128xf32> to vector<128x128xf32>
    %3 = arith.mulf %0, %2 : vector<128x128xf32>
    %c0_3 = arith.constant 0 : index
    %c0_4 = arith.constant 0 : index
    %4 = vector.load %arg3[%c0_3, %c0_4] : memref<1x128xf32, #tpu.memory_space<vmem>>, vector<1x128xf32>
    %5 = vector.broadcast %4 : vector<1x128xf32> to vector<128x128xf32>
    %6 = arith.addf %3, %5 : vector<128x128xf32>
    %cst = arith.constant 0.000000e+00 : f32
    %7 = vector.broadcast %cst : f32 to vector<128x128xf32>
    %8 = arith.maximumf %6, %7 : vector<128x128xf32>
    %c0_5 = arith.constant 0 : index
    %c0_6 = arith.constant 0 : index
    %9 = vector.load %arg4[%c0_5, %c0_6] : memref<128x128xf32, #tpu.memory_space<vmem>>, vector<128x128xf32>
    tpu.vector_store %arg4[%c0_5, %c0_6], %8 {strides = array<i32>} : memref<128x128xf32, #tpu.memory_space<vmem>>, vector<128x128xf32>,
    return
  }
  func.func @transform_0(%arg0: i32) -> (i32, i32) {
    %c0_i32 = arith.constant 0 : i32
    %c0_i32_0 = arith.constant 0 : i32
    return %arg0, %c0_i32 : i32, i32
  }
  func.func @transform_1(%arg0: i32) -> (i32, i32) {
    %c0_i32 = arith.constant 0 : i32
    %c0_i32_0 = arith.constant 0 : i32
    %c0_i32_1 = arith.constant 0 : i32
    return %c0_i32, %c0_i32_0 : i32, i32
  }
  func.func @transform_2(%arg0: i32) -> (i32, i32) {
    %c0_i32 = arith.constant 0 : i32
    %c0_i32_0 = arith.constant 0 : i32
    %c0_i32_1 = arith.constant 0 : i32
    return %c0_i32, %c0_i32_0 : i32, i32
  }
  func.func @transform_3(%arg0: i32) -> (i32, i32) {
    %c0_i32 = arith.constant 0 : i32
    %c0_i32_0 = arith.constant 0 : i32
    return %arg0, %c0_i32 : i32, i32
  }
}

module attributes {stable_mosaic.version = 11 : i64} {
  func.func @kernel(%arg0: i32, %arg1: memref<1x9x9x16xf32, #tpu.memory_space<vmem>>, %arg2: memref<4x16x128xbf16, #tpu.memory_space<vmem>>, %arg3: memref<1x64x128xf32, #tpu.memory_space<vmem>>, %arg4: memref<1x1x128xf32, #tpu.memory_space<vmem>>, %arg5: memref<1x1x128xf32, #tpu.memory_space<vmem>>) attributes {dimension_semantics = [#tpu.dimension_semantics<parallel>], iteration_bounds = array<i64: 2>, scalar_prefetch = 0 : i64, scratch_operands = 0 : i64, tpu.core_type = #tpu.core_type<tc>, window_params = [{transform_indices = @transform_0, window_bounds = array<i64: 1, 9, 9, 16>}, {pipeline_mode = #tpu.pipeline_mode<synchronous>, transform_indices = @transform_1, window_bounds = array<i64: 4, 16, 128>}, {transform_indices = @transform_2, window_bounds = array<i64: 1, 64, 128>}, {transform_indices = @transform_3, window_bounds = array<i64: 1, 1, 128>}, {transform_indices = @transform_4, window_bounds = array<i64: 1, 1, 128>}]} {
    %c0 = arith.constant 0 : index
    %c0_0 = arith.constant 0 : index
    %c0_1 = arith.constant 0 : index
    %c0_2 = arith.constant 0 : index
    %0 = vector.load %arg1[%c0, %c0_0, %c0_1, %c0_2] : memref<1x9x9x16xf32, #tpu.memory_space<vmem>>, vector<1x9x9x16xf32>
    %1 = vector.shape_cast %0 : vector<1x9x9x16xf32> to vector<9x9x16xf32>
    %cst = arith.constant 0.000000e+00 : f32
    %2 = vector.broadcast %cst : f32 to vector<64x128xf32>
    %3 = vector.extract_strided_slice %1 {offsets = [0, 0, 0], sizes = [8, 8, 16], strides = [1, 1, 1]} : vector<9x9x16xf32> to vector<8x8x16xf32>
    %4 = vector.shape_cast %3 : vector<8x8x16xf32> to vector<64x16xf32>
    %5 = arith.truncf %4 : vector<64x16xf32> to vector<64x16xbf16>
    %c0_3 = arith.constant 0 : index
    %c0_4 = arith.constant 0 : index
    %c0_5 = arith.constant 0 : index
    %6 = vector.load %arg2[%c0_3, %c0_4, %c0_5] : memref<4x16x128xbf16, #tpu.memory_space<vmem>>, vector<1x16x128xbf16>
    %7 = vector.shape_cast %6 : vector<1x16x128xbf16> to vector<16x128xbf16>
    %cst_6 = arith.constant dense<0.000000e+00> : vector<64x128xf32>
    %8 = tpu.matmul %5, %7, %cst_6 {dimension_numbers = #tpu.dot_dimension_numbers<[1], [0], [0], [1], [0, 0, 1, 1], [], []>} : vector<64x16xbf16>, vector<16x128xbf16>, vector<64x128xf32> -> vector<64x128xf32>
    %9 = arith.addf %2, %8 : vector<64x128xf32>
    %10 = vector.extract_strided_slice %1 {offsets = [0, 1, 0], sizes = [8, 8, 16], strides = [1, 1, 1]} : vector<9x9x16xf32> to vector<8x8x16xf32>
    %11 = vector.shape_cast %10 : vector<8x8x16xf32> to vector<64x16xf32>
    %12 = arith.truncf %11 : vector<64x16xf32> to vector<64x16xbf16>
    %c1 = arith.constant 1 : index
    %c0_7 = arith.constant 0 : index
    %c0_8 = arith.constant 0 : index
    %13 = vector.load %arg2[%c1, %c0_7, %c0_8] : memref<4x16x128xbf16, #tpu.memory_space<vmem>>, vector<1x16x128xbf16>
    %14 = vector.shape_cast %13 : vector<1x16x128xbf16> to vector<16x128xbf16>
    %cst_9 = arith.constant dense<0.000000e+00> : vector<64x128xf32>
    %15 = tpu.matmul %12, %14, %cst_9 {dimension_numbers = #tpu.dot_dimension_numbers<[1], [0], [0], [1], [0, 0, 1, 1], [], []>} : vector<64x16xbf16>, vector<16x128xbf16>, vector<64x128xf32> -> vector<64x128xf32>
    %16 = arith.addf %9, %15 : vector<64x128xf32>
    %17 = vector.extract_strided_slice %1 {offsets = [1, 0, 0], sizes = [8, 8, 16], strides = [1, 1, 1]} : vector<9x9x16xf32> to vector<8x8x16xf32>
    %18 = vector.shape_cast %17 : vector<8x8x16xf32> to vector<64x16xf32>
    %19 = arith.truncf %18 : vector<64x16xf32> to vector<64x16xbf16>
    %c2 = arith.constant 2 : index
    %c0_10 = arith.constant 0 : index
    %c0_11 = arith.constant 0 : index
    %20 = vector.load %arg2[%c2, %c0_10, %c0_11] : memref<4x16x128xbf16, #tpu.memory_space<vmem>>, vector<1x16x128xbf16>
    %21 = vector.shape_cast %20 : vector<1x16x128xbf16> to vector<16x128xbf16>
    %cst_12 = arith.constant dense<0.000000e+00> : vector<64x128xf32>
    %22 = tpu.matmul %19, %21, %cst_12 {dimension_numbers = #tpu.dot_dimension_numbers<[1], [0], [0], [1], [0, 0, 1, 1], [], []>} : vector<64x16xbf16>, vector<16x128xbf16>, vector<64x128xf32> -> vector<64x128xf32>
    %23 = arith.addf %16, %22 : vector<64x128xf32>
    %24 = vector.extract_strided_slice %1 {offsets = [1, 1, 0], sizes = [8, 8, 16], strides = [1, 1, 1]} : vector<9x9x16xf32> to vector<8x8x16xf32>
    %25 = vector.shape_cast %24 : vector<8x8x16xf32> to vector<64x16xf32>
    %26 = arith.truncf %25 : vector<64x16xf32> to vector<64x16xbf16>
    %c3 = arith.constant 3 : index
    %c0_13 = arith.constant 0 : index
    %c0_14 = arith.constant 0 : index
    %27 = vector.load %arg2[%c3, %c0_13, %c0_14] : memref<4x16x128xbf16, #tpu.memory_space<vmem>>, vector<1x16x128xbf16>
    %28 = vector.shape_cast %27 : vector<1x16x128xbf16> to vector<16x128xbf16>
    %cst_15 = arith.constant dense<0.000000e+00> : vector<64x128xf32>
    %29 = tpu.matmul %26, %28, %cst_15 {dimension_numbers = #tpu.dot_dimension_numbers<[1], [0], [0], [1], [0, 0, 1, 1], [], []>} : vector<64x16xbf16>, vector<16x128xbf16>, vector<64x128xf32> -> vector<64x128xf32>
    %30 = arith.addf %23, %29 : vector<64x128xf32>
    %c0_16 = arith.constant 0 : index
    %c0_17 = arith.constant 0 : index
    %c0_18 = arith.constant 0 : index
    %31 = vector.load %arg3[%c0_16, %c0_17, %c0_18] : memref<1x64x128xf32, #tpu.memory_space<vmem>>, vector<1x64x128xf32>
    %32 = vector.shape_cast %31 : vector<1x64x128xf32> to vector<64x128xf32>
    %33 = vector.shape_cast %30 : vector<64x128xf32> to vector<1x64x128xf32>
    tpu.vector_store %arg3[%c0_16, %c0_17, %c0_18], %33 {strides = array<i32>} : memref<1x64x128xf32, #tpu.memory_space<vmem>>, vector<1x64x128xf32>,
    %cst_19 = arith.constant dense<0.000000e+00> : vector<128xf32>
    %34 = vector.multi_reduction <add>, %30, %cst_19 [0] : vector<64x128xf32> to vector<128xf32>
    %35 = vector.shape_cast %34 : vector<128xf32> to vector<1x128xf32>
    %c0_20 = arith.constant 0 : index
    %c0_21 = arith.constant 0 : index
    %c0_22 = arith.constant 0 : index
    %36 = vector.load %arg4[%c0_20, %c0_21, %c0_22] : memref<1x1x128xf32, #tpu.memory_space<vmem>>, vector<1x1x128xf32>
    %37 = vector.shape_cast %36 : vector<1x1x128xf32> to vector<1x128xf32>
    %38 = vector.shape_cast %35 : vector<1x128xf32> to vector<1x1x128xf32>
    tpu.vector_store %arg4[%c0_20, %c0_21, %c0_22], %38 {strides = array<i32>} : memref<1x1x128xf32, #tpu.memory_space<vmem>>, vector<1x1x128xf32>,
    %39 = arith.mulf %30, %30 : vector<64x128xf32>
    %cst_23 = arith.constant dense<0.000000e+00> : vector<128xf32>
    %40 = vector.multi_reduction <add>, %39, %cst_23 [0] : vector<64x128xf32> to vector<128xf32>
    %41 = vector.shape_cast %40 : vector<128xf32> to vector<1x128xf32>
    %c0_24 = arith.constant 0 : index
    %c0_25 = arith.constant 0 : index
    %c0_26 = arith.constant 0 : index
    %42 = vector.load %arg5[%c0_24, %c0_25, %c0_26] : memref<1x1x128xf32, #tpu.memory_space<vmem>>, vector<1x1x128xf32>
    %43 = vector.shape_cast %42 : vector<1x1x128xf32> to vector<1x128xf32>
    %44 = vector.shape_cast %41 : vector<1x128xf32> to vector<1x1x128xf32>
    tpu.vector_store %arg5[%c0_24, %c0_25, %c0_26], %44 {strides = array<i32>} : memref<1x1x128xf32, #tpu.memory_space<vmem>>, vector<1x1x128xf32>,
    return
  }
  func.func @transform_0(%arg0: i32) -> (i32, i32, i32, i32) {
    %c0_i32 = arith.constant 0 : i32
    %c0_i32_0 = arith.constant 0 : i32
    %c0_i32_1 = arith.constant 0 : i32
    %c0_i32_2 = arith.constant 0 : i32
    return %arg0, %c0_i32, %c0_i32_0, %c0_i32_1 : i32, i32, i32, i32
  }
  func.func @transform_1(%arg0: i32) -> (i32, i32, i32) {
    %c0_i32 = arith.constant 0 : i32
    %c0_i32_0 = arith.constant 0 : i32
    %c0_i32_1 = arith.constant 0 : i32
    %c0_i32_2 = arith.constant 0 : i32
    return %c0_i32, %c0_i32_0, %c0_i32_1 : i32, i32, i32
  }
  func.func @transform_2(%arg0: i32) -> (i32, i32, i32) {
    %c0_i32 = arith.constant 0 : i32
    %c0_i32_0 = arith.constant 0 : i32
    %c0_i32_1 = arith.constant 0 : i32
    return %arg0, %c0_i32, %c0_i32_0 : i32, i32, i32
  }
  func.func @transform_3(%arg0: i32) -> (i32, i32, i32) {
    %c0_i32 = arith.constant 0 : i32
    %c0_i32_0 = arith.constant 0 : i32
    %c0_i32_1 = arith.constant 0 : i32
    return %arg0, %c0_i32, %c0_i32_0 : i32, i32, i32
  }
  func.func @transform_4(%arg0: i32) -> (i32, i32, i32) {
    %c0_i32 = arith.constant 0 : i32
    %c0_i32_0 = arith.constant 0 : i32
    %c0_i32_1 = arith.constant 0 : i32
    return %arg0, %c0_i32, %c0_i32_0 : i32, i32, i32
  }
}

module attributes {stable_mosaic.version = 11 : i64} {
  func.func @kernel(%arg0: i32, %arg1: memref<1x10x10x128xf32, #tpu.memory_space<vmem>>, %arg2: memref<9x128x128xbf16, #tpu.memory_space<vmem>>, %arg3: memref<1x64x128xf32, #tpu.memory_space<vmem>>, %arg4: memref<1x1x128xf32, #tpu.memory_space<vmem>>, %arg5: memref<1x1x128xf32, #tpu.memory_space<vmem>>) attributes {dimension_semantics = [#tpu.dimension_semantics<parallel>], iteration_bounds = array<i64: 2>, scalar_prefetch = 0 : i64, scratch_operands = 0 : i64, tpu.core_type = #tpu.core_type<tc>, window_params = [{transform_indices = @transform_0, window_bounds = array<i64: 1, 10, 10, 128>}, {pipeline_mode = #tpu.pipeline_mode<synchronous>, transform_indices = @transform_1, window_bounds = array<i64: 9, 128, 128>}, {transform_indices = @transform_2, window_bounds = array<i64: 1, 64, 128>}, {transform_indices = @transform_3, window_bounds = array<i64: 1, 1, 128>}, {transform_indices = @transform_4, window_bounds = array<i64: 1, 1, 128>}]} {
    %c0 = arith.constant 0 : index
    %c0_0 = arith.constant 0 : index
    %c0_1 = arith.constant 0 : index
    %c0_2 = arith.constant 0 : index
    %0 = vector.load %arg1[%c0, %c0_0, %c0_1, %c0_2] : memref<1x10x10x128xf32, #tpu.memory_space<vmem>>, vector<1x10x10x128xf32>
    %1 = vector.shape_cast %0 : vector<1x10x10x128xf32> to vector<10x10x128xf32>
    %cst = arith.constant 0.000000e+00 : f32
    %2 = vector.broadcast %cst : f32 to vector<64x128xf32>
    %3 = vector.extract_strided_slice %1 {offsets = [0, 0, 0], sizes = [8, 8, 128], strides = [1, 1, 1]} : vector<10x10x128xf32> to vector<8x8x128xf32>
    %4 = vector.shape_cast %3 : vector<8x8x128xf32> to vector<64x128xf32>
    %5 = arith.truncf %4 : vector<64x128xf32> to vector<64x128xbf16>
    %c0_3 = arith.constant 0 : index
    %c0_4 = arith.constant 0 : index
    %c0_5 = arith.constant 0 : index
    %6 = vector.load %arg2[%c0_3, %c0_4, %c0_5] : memref<9x128x128xbf16, #tpu.memory_space<vmem>>, vector<1x128x128xbf16>
    %7 = vector.shape_cast %6 : vector<1x128x128xbf16> to vector<128x128xbf16>
    %cst_6 = arith.constant dense<0.000000e+00> : vector<64x128xf32>
    %8 = tpu.matmul %5, %7, %cst_6 {dimension_numbers = #tpu.dot_dimension_numbers<[1], [0], [0], [1], [0, 0, 1, 1], [], []>} : vector<64x128xbf16>, vector<128x128xbf16>, vector<64x128xf32> -> vector<64x128xf32>
    %9 = arith.addf %2, %8 : vector<64x128xf32>
    %10 = vector.extract_strided_slice %1 {offsets = [0, 1, 0], sizes = [8, 8, 128], strides = [1, 1, 1]} : vector<10x10x128xf32> to vector<8x8x128xf32>
    %11 = vector.shape_cast %10 : vector<8x8x128xf32> to vector<64x128xf32>
    %12 = arith.truncf %11 : vector<64x128xf32> to vector<64x128xbf16>
    %c1 = arith.constant 1 : index
    %c0_7 = arith.constant 0 : index
    %c0_8 = arith.constant 0 : index
    %13 = vector.load %arg2[%c1, %c0_7, %c0_8] : memref<9x128x128xbf16, #tpu.memory_space<vmem>>, vector<1x128x128xbf16>
    %14 = vector.shape_cast %13 : vector<1x128x128xbf16> to vector<128x128xbf16>
    %cst_9 = arith.constant dense<0.000000e+00> : vector<64x128xf32>
    %15 = tpu.matmul %12, %14, %cst_9 {dimension_numbers = #tpu.dot_dimension_numbers<[1], [0], [0], [1], [0, 0, 1, 1], [], []>} : vector<64x128xbf16>, vector<128x128xbf16>, vector<64x128xf32> -> vector<64x128xf32>
    %16 = arith.addf %9, %15 : vector<64x128xf32>
    %17 = vector.extract_strided_slice %1 {offsets = [0, 2, 0], sizes = [8, 8, 128], strides = [1, 1, 1]} : vector<10x10x128xf32> to vector<8x8x128xf32>
    %18 = vector.shape_cast %17 : vector<8x8x128xf32> to vector<64x128xf32>
    %19 = arith.truncf %18 : vector<64x128xf32> to vector<64x128xbf16>
    %c2 = arith.constant 2 : index
    %c0_10 = arith.constant 0 : index
    %c0_11 = arith.constant 0 : index
    %20 = vector.load %arg2[%c2, %c0_10, %c0_11] : memref<9x128x128xbf16, #tpu.memory_space<vmem>>, vector<1x128x128xbf16>
    %21 = vector.shape_cast %20 : vector<1x128x128xbf16> to vector<128x128xbf16>
    %cst_12 = arith.constant dense<0.000000e+00> : vector<64x128xf32>
    %22 = tpu.matmul %19, %21, %cst_12 {dimension_numbers = #tpu.dot_dimension_numbers<[1], [0], [0], [1], [0, 0, 1, 1], [], []>} : vector<64x128xbf16>, vector<128x128xbf16>, vector<64x128xf32> -> vector<64x128xf32>
    %23 = arith.addf %16, %22 : vector<64x128xf32>
    %24 = vector.extract_strided_slice %1 {offsets = [1, 0, 0], sizes = [8, 8, 128], strides = [1, 1, 1]} : vector<10x10x128xf32> to vector<8x8x128xf32>
    %25 = vector.shape_cast %24 : vector<8x8x128xf32> to vector<64x128xf32>
    %26 = arith.truncf %25 : vector<64x128xf32> to vector<64x128xbf16>
    %c3 = arith.constant 3 : index
    %c0_13 = arith.constant 0 : index
    %c0_14 = arith.constant 0 : index
    %27 = vector.load %arg2[%c3, %c0_13, %c0_14] : memref<9x128x128xbf16, #tpu.memory_space<vmem>>, vector<1x128x128xbf16>
    %28 = vector.shape_cast %27 : vector<1x128x128xbf16> to vector<128x128xbf16>
    %cst_15 = arith.constant dense<0.000000e+00> : vector<64x128xf32>
    %29 = tpu.matmul %26, %28, %cst_15 {dimension_numbers = #tpu.dot_dimension_numbers<[1], [0], [0], [1], [0, 0, 1, 1], [], []>} : vector<64x128xbf16>, vector<128x128xbf16>, vector<64x128xf32> -> vector<64x128xf32>
    %30 = arith.addf %23, %29 : vector<64x128xf32>
    %31 = vector.extract_strided_slice %1 {offsets = [1, 1, 0], sizes = [8, 8, 128], strides = [1, 1, 1]} : vector<10x10x128xf32> to vector<8x8x128xf32>
    %32 = vector.shape_cast %31 : vector<8x8x128xf32> to vector<64x128xf32>
    %33 = arith.truncf %32 : vector<64x128xf32> to vector<64x128xbf16>
    %c4 = arith.constant 4 : index
    %c0_16 = arith.constant 0 : index
    %c0_17 = arith.constant 0 : index
    %34 = vector.load %arg2[%c4, %c0_16, %c0_17] : memref<9x128x128xbf16, #tpu.memory_space<vmem>>, vector<1x128x128xbf16>
    %35 = vector.shape_cast %34 : vector<1x128x128xbf16> to vector<128x128xbf16>
    %cst_18 = arith.constant dense<0.000000e+00> : vector<64x128xf32>
    %36 = tpu.matmul %33, %35, %cst_18 {dimension_numbers = #tpu.dot_dimension_numbers<[1], [0], [0], [1], [0, 0, 1, 1], [], []>} : vector<64x128xbf16>, vector<128x128xbf16>, vector<64x128xf32> -> vector<64x128xf32>
    %37 = arith.addf %30, %36 : vector<64x128xf32>
    %38 = vector.extract_strided_slice %1 {offsets = [1, 2, 0], sizes = [8, 8, 128], strides = [1, 1, 1]} : vector<10x10x128xf32> to vector<8x8x128xf32>
    %39 = vector.shape_cast %38 : vector<8x8x128xf32> to vector<64x128xf32>
    %40 = arith.truncf %39 : vector<64x128xf32> to vector<64x128xbf16>
    %c5 = arith.constant 5 : index
    %c0_19 = arith.constant 0 : index
    %c0_20 = arith.constant 0 : index
    %41 = vector.load %arg2[%c5, %c0_19, %c0_20] : memref<9x128x128xbf16, #tpu.memory_space<vmem>>, vector<1x128x128xbf16>
    %42 = vector.shape_cast %41 : vector<1x128x128xbf16> to vector<128x128xbf16>
    %cst_21 = arith.constant dense<0.000000e+00> : vector<64x128xf32>
    %43 = tpu.matmul %40, %42, %cst_21 {dimension_numbers = #tpu.dot_dimension_numbers<[1], [0], [0], [1], [0, 0, 1, 1], [], []>} : vector<64x128xbf16>, vector<128x128xbf16>, vector<64x128xf32> -> vector<64x128xf32>
    %44 = arith.addf %37, %43 : vector<64x128xf32>
    %45 = vector.extract_strided_slice %1 {offsets = [2, 0, 0], sizes = [8, 8, 128], strides = [1, 1, 1]} : vector<10x10x128xf32> to vector<8x8x128xf32>
    %46 = vector.shape_cast %45 : vector<8x8x128xf32> to vector<64x128xf32>
    %47 = arith.truncf %46 : vector<64x128xf32> to vector<64x128xbf16>
    %c6 = arith.constant 6 : index
    %c0_22 = arith.constant 0 : index
    %c0_23 = arith.constant 0 : index
    %48 = vector.load %arg2[%c6, %c0_22, %c0_23] : memref<9x128x128xbf16, #tpu.memory_space<vmem>>, vector<1x128x128xbf16>
    %49 = vector.shape_cast %48 : vector<1x128x128xbf16> to vector<128x128xbf16>
    %cst_24 = arith.constant dense<0.000000e+00> : vector<64x128xf32>
    %50 = tpu.matmul %47, %49, %cst_24 {dimension_numbers = #tpu.dot_dimension_numbers<[1], [0], [0], [1], [0, 0, 1, 1], [], []>} : vector<64x128xbf16>, vector<128x128xbf16>, vector<64x128xf32> -> vector<64x128xf32>
    %51 = arith.addf %44, %50 : vector<64x128xf32>
    %52 = vector.extract_strided_slice %1 {offsets = [2, 1, 0], sizes = [8, 8, 128], strides = [1, 1, 1]} : vector<10x10x128xf32> to vector<8x8x128xf32>
    %53 = vector.shape_cast %52 : vector<8x8x128xf32> to vector<64x128xf32>
    %54 = arith.truncf %53 : vector<64x128xf32> to vector<64x128xbf16>
    %c7 = arith.constant 7 : index
    %c0_25 = arith.constant 0 : index
    %c0_26 = arith.constant 0 : index
    %55 = vector.load %arg2[%c7, %c0_25, %c0_26] : memref<9x128x128xbf16, #tpu.memory_space<vmem>>, vector<1x128x128xbf16>
    %56 = vector.shape_cast %55 : vector<1x128x128xbf16> to vector<128x128xbf16>
    %cst_27 = arith.constant dense<0.000000e+00> : vector<64x128xf32>
    %57 = tpu.matmul %54, %56, %cst_27 {dimension_numbers = #tpu.dot_dimension_numbers<[1], [0], [0], [1], [0, 0, 1, 1], [], []>} : vector<64x128xbf16>, vector<128x128xbf16>, vector<64x128xf32> -> vector<64x128xf32>
    %58 = arith.addf %51, %57 : vector<64x128xf32>
    %59 = vector.extract_strided_slice %1 {offsets = [2, 2, 0], sizes = [8, 8, 128], strides = [1, 1, 1]} : vector<10x10x128xf32> to vector<8x8x128xf32>
    %60 = vector.shape_cast %59 : vector<8x8x128xf32> to vector<64x128xf32>
    %61 = arith.truncf %60 : vector<64x128xf32> to vector<64x128xbf16>
    %c8 = arith.constant 8 : index
    %c0_28 = arith.constant 0 : index
    %c0_29 = arith.constant 0 : index
    %62 = vector.load %arg2[%c8, %c0_28, %c0_29] : memref<9x128x128xbf16, #tpu.memory_space<vmem>>, vector<1x128x128xbf16>
    %63 = vector.shape_cast %62 : vector<1x128x128xbf16> to vector<128x128xbf16>
    %cst_30 = arith.constant dense<0.000000e+00> : vector<64x128xf32>
    %64 = tpu.matmul %61, %63, %cst_30 {dimension_numbers = #tpu.dot_dimension_numbers<[1], [0], [0], [1], [0, 0, 1, 1], [], []>} : vector<64x128xbf16>, vector<128x128xbf16>, vector<64x128xf32> -> vector<64x128xf32>
    %65 = arith.addf %58, %64 : vector<64x128xf32>
    %c0_31 = arith.constant 0 : index
    %c0_32 = arith.constant 0 : index
    %c0_33 = arith.constant 0 : index
    %66 = vector.load %arg3[%c0_31, %c0_32, %c0_33] : memref<1x64x128xf32, #tpu.memory_space<vmem>>, vector<1x64x128xf32>
    %67 = vector.shape_cast %66 : vector<1x64x128xf32> to vector<64x128xf32>
    %68 = vector.shape_cast %65 : vector<64x128xf32> to vector<1x64x128xf32>
    tpu.vector_store %arg3[%c0_31, %c0_32, %c0_33], %68 {strides = array<i32>} : memref<1x64x128xf32, #tpu.memory_space<vmem>>, vector<1x64x128xf32>,
    %cst_34 = arith.constant dense<0.000000e+00> : vector<128xf32>
    %69 = vector.multi_reduction <add>, %65, %cst_34 [0] : vector<64x128xf32> to vector<128xf32>
    %70 = vector.shape_cast %69 : vector<128xf32> to vector<1x128xf32>
    %c0_35 = arith.constant 0 : index
    %c0_36 = arith.constant 0 : index
    %c0_37 = arith.constant 0 : index
    %71 = vector.load %arg4[%c0_35, %c0_36, %c0_37] : memref<1x1x128xf32, #tpu.memory_space<vmem>>, vector<1x1x128xf32>
    %72 = vector.shape_cast %71 : vector<1x1x128xf32> to vector<1x128xf32>
    %73 = vector.shape_cast %70 : vector<1x128xf32> to vector<1x1x128xf32>
    tpu.vector_store %arg4[%c0_35, %c0_36, %c0_37], %73 {strides = array<i32>} : memref<1x1x128xf32, #tpu.memory_space<vmem>>, vector<1x1x128xf32>,
    %74 = arith.mulf %65, %65 : vector<64x128xf32>
    %cst_38 = arith.constant dense<0.000000e+00> : vector<128xf32>
    %75 = vector.multi_reduction <add>, %74, %cst_38 [0] : vector<64x128xf32> to vector<128xf32>
    %76 = vector.shape_cast %75 : vector<128xf32> to vector<1x128xf32>
    %c0_39 = arith.constant 0 : index
    %c0_40 = arith.constant 0 : index
    %c0_41 = arith.constant 0 : index
    %77 = vector.load %arg5[%c0_39, %c0_40, %c0_41] : memref<1x1x128xf32, #tpu.memory_space<vmem>>, vector<1x1x128xf32>
    %78 = vector.shape_cast %77 : vector<1x1x128xf32> to vector<1x128xf32>
    %79 = vector.shape_cast %76 : vector<1x128xf32> to vector<1x1x128xf32>
    tpu.vector_store %arg5[%c0_39, %c0_40, %c0_41], %79 {strides = array<i32>} : memref<1x1x128xf32, #tpu.memory_space<vmem>>, vector<1x1x128xf32>,
    return
  }
  func.func @transform_0(%arg0: i32) -> (i32, i32, i32, i32) {
    %c0_i32 = arith.constant 0 : i32
    %c0_i32_0 = arith.constant 0 : i32
    %c0_i32_1 = arith.constant 0 : i32
    %c0_i32_2 = arith.constant 0 : i32
    return %arg0, %c0_i32, %c0_i32_0, %c0_i32_1 : i32, i32, i32, i32
  }
  func.func @transform_1(%arg0: i32) -> (i32, i32, i32) {
    %c0_i32 = arith.constant 0 : i32
    %c0_i32_0 = arith.constant 0 : i32
    %c0_i32_1 = arith.constant 0 : i32
    %c0_i32_2 = arith.constant 0 : i32
    return %c0_i32, %c0_i32_0, %c0_i32_1 : i32, i32, i32
  }
  func.func @transform_2(%arg0: i32) -> (i32, i32, i32) {
    %c0_i32 = arith.constant 0 : i32
    %c0_i32_0 = arith.constant 0 : i32
    %c0_i32_1 = arith.constant 0 : i32
    return %arg0, %c0_i32, %c0_i32_0 : i32, i32, i32
  }
  func.func @transform_3(%arg0: i32) -> (i32, i32, i32) {
    %c0_i32 = arith.constant 0 : i32
    %c0_i32_0 = arith.constant 0 : i32
    %c0_i32_1 = arith.constant 0 : i32
    return %arg0, %c0_i32, %c0_i32_0 : i32, i32, i32
  }
  func.func @transform_4(%arg0: i32) -> (i32, i32, i32) {
    %c0_i32 = arith.constant 0 : i32
    %c0_i32_0 = arith.constant 0 : i32
    %c0_i32_1 = arith.constant 0 : i32
    return %arg0, %c0_i32, %c0_i32_0 : i32, i32, i32
  }
}

module attributes {stable_mosaic.version = 11 : i64} {
  func.func @kernel(%arg0: i32, %arg1: memref<1x8x8x4xf32, #tpu.memory_space<vmem>>, %arg2: memref<1x4x128xbf16, #tpu.memory_space<vmem>>, %arg3: memref<1x64x128xf32, #tpu.memory_space<vmem>>, %arg4: memref<1x1x128xf32, #tpu.memory_space<vmem>>, %arg5: memref<1x1x128xf32, #tpu.memory_space<vmem>>) attributes {dimension_semantics = [#tpu.dimension_semantics<parallel>], iteration_bounds = array<i64: 2>, scalar_prefetch = 0 : i64, scratch_operands = 0 : i64, tpu.core_type = #tpu.core_type<tc>, window_params = [{transform_indices = @transform_0, window_bounds = array<i64: 1, 8, 8, 4>}, {pipeline_mode = #tpu.pipeline_mode<synchronous>, transform_indices = @transform_1, window_bounds = array<i64: 1, 4, 128>}, {transform_indices = @transform_2, window_bounds = array<i64: 1, 64, 128>}, {transform_indices = @transform_3, window_bounds = array<i64: 1, 1, 128>}, {transform_indices = @transform_4, window_bounds = array<i64: 1, 1, 128>}]} {
    %c0 = arith.constant 0 : index
    %c0_0 = arith.constant 0 : index
    %c0_1 = arith.constant 0 : index
    %c0_2 = arith.constant 0 : index
    %0 = vector.load %arg1[%c0, %c0_0, %c0_1, %c0_2] : memref<1x8x8x4xf32, #tpu.memory_space<vmem>>, vector<1x8x8x4xf32>
    %1 = vector.shape_cast %0 : vector<1x8x8x4xf32> to vector<8x8x4xf32>
    %cst = arith.constant 0.000000e+00 : f32
    %2 = vector.broadcast %cst : f32 to vector<64x128xf32>
    %3 = vector.shape_cast %1 : vector<8x8x4xf32> to vector<64x4xf32>
    %4 = arith.truncf %3 : vector<64x4xf32> to vector<64x4xbf16>
    %c0_3 = arith.constant 0 : index
    %c0_4 = arith.constant 0 : index
    %c0_5 = arith.constant 0 : index
    %5 = vector.load %arg2[%c0_3, %c0_4, %c0_5] : memref<1x4x128xbf16, #tpu.memory_space<vmem>>, vector<1x4x128xbf16>
    %6 = vector.shape_cast %5 : vector<1x4x128xbf16> to vector<4x128xbf16>
    %cst_6 = arith.constant dense<0.000000e+00> : vector<64x128xf32>
    %7 = tpu.matmul %4, %6, %cst_6 {dimension_numbers = #tpu.dot_dimension_numbers<[1], [0], [0], [1], [0, 0, 1, 1], [], []>} : vector<64x4xbf16>, vector<4x128xbf16>, vector<64x128xf32> -> vector<64x128xf32>
    %8 = arith.addf %2, %7 : vector<64x128xf32>
    %c0_7 = arith.constant 0 : index
    %c0_8 = arith.constant 0 : index
    %c0_9 = arith.constant 0 : index
    %9 = vector.load %arg3[%c0_7, %c0_8, %c0_9] : memref<1x64x128xf32, #tpu.memory_space<vmem>>, vector<1x64x128xf32>
    %10 = vector.shape_cast %9 : vector<1x64x128xf32> to vector<64x128xf32>
    %11 = vector.shape_cast %8 : vector<64x128xf32> to vector<1x64x128xf32>
    tpu.vector_store %arg3[%c0_7, %c0_8, %c0_9], %11 {strides = array<i32>} : memref<1x64x128xf32, #tpu.memory_space<vmem>>, vector<1x64x128xf32>,
    %cst_10 = arith.constant dense<0.000000e+00> : vector<128xf32>
    %12 = vector.multi_reduction <add>, %8, %cst_10 [0] : vector<64x128xf32> to vector<128xf32>
    %13 = vector.shape_cast %12 : vector<128xf32> to vector<1x128xf32>
    %c0_11 = arith.constant 0 : index
    %c0_12 = arith.constant 0 : index
    %c0_13 = arith.constant 0 : index
    %14 = vector.load %arg4[%c0_11, %c0_12, %c0_13] : memref<1x1x128xf32, #tpu.memory_space<vmem>>, vector<1x1x128xf32>
    %15 = vector.shape_cast %14 : vector<1x1x128xf32> to vector<1x128xf32>
    %16 = vector.shape_cast %13 : vector<1x128xf32> to vector<1x1x128xf32>
    tpu.vector_store %arg4[%c0_11, %c0_12, %c0_13], %16 {strides = array<i32>} : memref<1x1x128xf32, #tpu.memory_space<vmem>>, vector<1x1x128xf32>,
    %17 = arith.mulf %8, %8 : vector<64x128xf32>
    %cst_14 = arith.constant dense<0.000000e+00> : vector<128xf32>
    %18 = vector.multi_reduction <add>, %17, %cst_14 [0] : vector<64x128xf32> to vector<128xf32>
    %19 = vector.shape_cast %18 : vector<128xf32> to vector<1x128xf32>
    %c0_15 = arith.constant 0 : index
    %c0_16 = arith.constant 0 : index
    %c0_17 = arith.constant 0 : index
    %20 = vector.load %arg5[%c0_15, %c0_16, %c0_17] : memref<1x1x128xf32, #tpu.memory_space<vmem>>, vector<1x1x128xf32>
    %21 = vector.shape_cast %20 : vector<1x1x128xf32> to vector<1x128xf32>
    %22 = vector.shape_cast %19 : vector<1x128xf32> to vector<1x1x128xf32>
    tpu.vector_store %arg5[%c0_15, %c0_16, %c0_17], %22 {strides = array<i32>} : memref<1x1x128xf32, #tpu.memory_space<vmem>>, vector<1x1x128xf32>,
    return
  }
  func.func @transform_0(%arg0: i32) -> (i32, i32, i32, i32) {
    %c0_i32 = arith.constant 0 : i32
    %c0_i32_0 = arith.constant 0 : i32
    %c0_i32_1 = arith.constant 0 : i32
    %c0_i32_2 = arith.constant 0 : i32
    return %arg0, %c0_i32, %c0_i32_0, %c0_i32_1 : i32, i32, i32, i32
  }
  func.func @transform_1(%arg0: i32) -> (i32, i32, i32) {
    %c0_i32 = arith.constant 0 : i32
    %c0_i32_0 = arith.constant 0 : i32
    %c0_i32_1 = arith.constant 0 : i32
    %c0_i32_2 = arith.constant 0 : i32
    return %c0_i32, %c0_i32_0, %c0_i32_1 : i32, i32, i32
  }
  func.func @transform_2(%arg0: i32) -> (i32, i32, i32) {
    %c0_i32 = arith.constant 0 : i32
    %c0_i32_0 = arith.constant 0 : i32
    %c0_i32_1 = arith.constant 0 : i32
    return %arg0, %c0_i32, %c0_i32_0 : i32, i32, i32
  }
  func.func @transform_3(%arg0: i32) -> (i32, i32, i32) {
    %c0_i32 = arith.constant 0 : i32
    %c0_i32_0 = arith.constant 0 : i32
    %c0_i32_1 = arith.constant 0 : i32
    return %arg0, %c0_i32, %c0_i32_0 : i32, i32, i32
  }
  func.func @transform_4(%arg0: i32) -> (i32, i32, i32) {
    %c0_i32 = arith.constant 0 : i32
    %c0_i32_0 = arith.constant 0 : i32
    %c0_i32_1 = arith.constant 0 : i32
    return %arg0, %c0_i32, %c0_i32_0 : i32, i32, i32
  }
}

module attributes {stable_mosaic.version = 11 : i64} {
  func.func @kernel(%arg0: i32, %arg1: memref<128x128xf32, #tpu.memory_space<vmem>>, %arg2: memref<1x128xf32, #tpu.memory_space<vmem>>, %arg3: memref<1x128xf32, #tpu.memory_space<vmem>>, %arg4: memref<128x128xf32, #tpu.memory_space<vmem>>, %arg5: memref<1x128xf32, #tpu.memory_space<vmem>>, %arg6: memref<1x128xf32, #tpu.memory_space<vmem>>, %arg7: memref<128x128xf32, #tpu.memory_space<vmem>>) attributes {dimension_semantics = [#tpu.dimension_semantics<parallel>], iteration_bounds = array<i64: 1>, scalar_prefetch = 0 : i64, scratch_operands = 0 : i64, tpu.core_type = #tpu.core_type<tc>, window_params = [{transform_indices = @transform_0, window_bounds = array<i64: 128, 128>}, {pipeline_mode = #tpu.pipeline_mode<synchronous>, transform_indices = @transform_1, window_bounds = array<i64: 1, 128>}, {pipeline_mode = #tpu.pipeline_mode<synchronous>, transform_indices = @transform_2, window_bounds = array<i64: 1, 128>}, {transform_indices = @transform_3, window_bounds = array<i64: 128, 128>}, {pipeline_mode = #tpu.pipeline_mode<synchronous>, transform_indices = @transform_4, window_bounds = array<i64: 1, 128>}, {pipeline_mode = #tpu.pipeline_mode<synchronous>, transform_indices = @transform_5, window_bounds = array<i64: 1, 128>}, {transform_indices = @transform_6, window_bounds = array<i64: 128, 128>}]} {
    %c0 = arith.constant 0 : index
    %c0_0 = arith.constant 0 : index
    %0 = vector.load %arg1[%c0, %c0_0] : memref<128x128xf32, #tpu.memory_space<vmem>>, vector<128x128xf32>
    %c0_1 = arith.constant 0 : index
    %c0_2 = arith.constant 0 : index
    %1 = vector.load %arg2[%c0_1, %c0_2] : memref<1x128xf32, #tpu.memory_space<vmem>>, vector<1x128xf32>
    %2 = vector.broadcast %1 : vector<1x128xf32> to vector<128x128xf32>
    %3 = arith.mulf %0, %2 : vector<128x128xf32>
    %c0_3 = arith.constant 0 : index
    %c0_4 = arith.constant 0 : index
    %4 = vector.load %arg3[%c0_3, %c0_4] : memref<1x128xf32, #tpu.memory_space<vmem>>, vector<1x128xf32>
    %5 = vector.broadcast %4 : vector<1x128xf32> to vector<128x128xf32>
    %6 = arith.addf %3, %5 : vector<128x128xf32>
    %c0_5 = arith.constant 0 : index
    %c0_6 = arith.constant 0 : index
    %7 = vector.load %arg4[%c0_5, %c0_6] : memref<128x128xf32, #tpu.memory_space<vmem>>, vector<128x128xf32>
    %c0_7 = arith.constant 0 : index
    %c0_8 = arith.constant 0 : index
    %8 = vector.load %arg5[%c0_7, %c0_8] : memref<1x128xf32, #tpu.memory_space<vmem>>, vector<1x128xf32>
    %9 = vector.broadcast %8 : vector<1x128xf32> to vector<128x128xf32>
    %10 = arith.mulf %7, %9 : vector<128x128xf32>
    %11 = arith.addf %6, %10 : vector<128x128xf32>
    %c0_9 = arith.constant 0 : index
    %c0_10 = arith.constant 0 : index
    %12 = vector.load %arg6[%c0_9, %c0_10] : memref<1x128xf32, #tpu.memory_space<vmem>>, vector<1x128xf32>
    %13 = vector.broadcast %12 : vector<1x128xf32> to vector<128x128xf32>
    %14 = arith.addf %11, %13 : vector<128x128xf32>
    %cst = arith.constant 0.000000e+00 : f32
    %15 = vector.broadcast %cst : f32 to vector<128x128xf32>
    %16 = arith.maximumf %14, %15 : vector<128x128xf32>
    %c0_11 = arith.constant 0 : index
    %c0_12 = arith.constant 0 : index
    %17 = vector.load %arg7[%c0_11, %c0_12] : memref<128x128xf32, #tpu.memory_space<vmem>>, vector<128x128xf32>
    tpu.vector_store %arg7[%c0_11, %c0_12], %16 {strides = array<i32>} : memref<128x128xf32, #tpu.memory_space<vmem>>, vector<128x128xf32>,
    return
  }
  func.func @transform_0(%arg0: i32) -> (i32, i32) {
    %c0_i32 = arith.constant 0 : i32
    %c0_i32_0 = arith.constant 0 : i32
    return %arg0, %c0_i32 : i32, i32
  }
  func.func @transform_1(%arg0: i32) -> (i32, i32) {
    %c0_i32 = arith.constant 0 : i32
    %c0_i32_0 = arith.constant 0 : i32
    %c0_i32_1 = arith.constant 0 : i32
    return %c0_i32, %c0_i32_0 : i32, i32
  }
  func.func @transform_2(%arg0: i32) -> (i32, i32) {
    %c0_i32 = arith.constant 0 : i32
    %c0_i32_0 = arith.constant 0 : i32
    %c0_i32_1 = arith.constant 0 : i32
    return %c0_i32, %c0_i32_0 : i32, i32
  }
  func.func @transform_3(%arg0: i32) -> (i32, i32) {
    %c0_i32 = arith.constant 0 : i32
    %c0_i32_0 = arith.constant 0 : i32
    return %arg0, %c0_i32 : i32, i32
  }
  func.func @transform_4(%arg0: i32) -> (i32, i32) {
    %c0_i32 = arith.constant 0 : i32
    %c0_i32_0 = arith.constant 0 : i32
    %c0_i32_1 = arith.constant 0 : i32
    return %c0_i32, %c0_i32_0 : i32, i32
  }
  func.func @transform_5(%arg0: i32) -> (i32, i32) {
    %c0_i32 = arith.constant 0 : i32
    %c0_i32_0 = arith.constant 0 : i32
    %c0_i32_1 = arith.constant 0 : i32
    return %c0_i32, %c0_i32_0 : i32, i32
  }
  func.func @transform_6(%arg0: i32) -> (i32, i32) {
    %c0_i32 = arith.constant 0 : i32
    %c0_i32_0 = arith.constant 0 : i32
    return %arg0, %c0_i32 : i32, i32
  }
}

</mosaic_0001>

<bundles_post_ra>
// kernel: basic_block_forward.6
= control target key start
LH: loop header
LB: loop body
LE: loop exit
PB: predicated region body
PF: predicated region fallthrough
CT: control target
= control target key end

     0   :  { %s254_s0 = inlined_call_operand.vmem [shape: f32[128,128], index: 0, kind: input, shape index: {}]   ;;  %s255_s1 = inlined_call_operand.vmem [shape: f32[1,128], index: 1, kind: input, shape index: {}]   ;;  %s256_s2 = inlined_call_operand.vmem [shape: f32[1,128], index: 2, kind: input, shape index: {}]   ;;  %s257_s3 = inlined_call_operand.vmem [shape: f32[128,128], index: 3, kind: output, shape index: {}]  }
   0x1   :  { %v14_v0 = vld [vmem:[%s254_s0] sm:$0xff]  ;;  %v15_v4 = vld [vmem:[%s254_s0 + $0x8] sm:$0xff]  ;;  %v16_v5 = vld [vmem:[%s254_s0 + $0x10] sm:$0xff] }
   0x2   :  { %v112_v1 = vld [vmem:[%s255_s1] ss:$0 sm:$0xff]  ;;  %v17_v6 = vld [vmem:[%s254_s0 + $0x18] sm:$0xff]  ;;  %v19_v11 = vld [vmem:[%s254_s0 + $0x28] sm:$0xff] }
   0x3   :  { %v143_v2 = vld [vmem:[%s256_s2] ss:$0 sm:$0xff]  ;;  %v37_v3 = vmul.f32 %v112_v1, %v14_v0  ;;  %v38_v7 = vmul.f32 %v112_v1, %v15_v4  ;;  %v39_v8 = vmul.f32 %v112_v1, %v16_v5  ;;  %v40_v9 = vmul.f32 %v112_v1, %v17_v6  ;;  %v20_v12 = vld [vmem:[%s254_s0 + $0x30] sm:$0xff]  ;;  %v21_v17 = vld [vmem:[%s254_s0 + $0x38] sm:$0xff] }
   0x4   :  { %v18_v10 = vld [vmem:[%s254_s0 + $0x20] sm:$0xff]  ;;  %v42_v15 = vmul.f32 %v112_v1, %v19_v11  ;;  %v43_v16 = vmul.f32 %v112_v1, %v20_v12  ;;  %v44_v21 = vmul.f32 %v112_v1, %v21_v17  ;;  %v23_v27 = vld [vmem:[%s254_s0 + $0x48] sm:$0xff]  ;;  %v24_v28 = vld [vmem:[%s254_s0 + $0x50] sm:$0xff] }
   0x5   :  { %v60_v13 = vadd.f32 %v143_v2, %v37_v3  ;;  %v41_v14 = vmul.f32 %v112_v1, %v18_v10  ;;  %v61_v18 = vadd.f32 %v143_v2, %v38_v7  ;;  %v62_v19 = vadd.f32 %v143_v2, %v39_v8  ;;  %v22_v22 = vld [vmem:[%s254_s0 + $0x40] sm:$0xff]  ;;  %v25_v29 = vld [vmem:[%s254_s0 + $0x58] sm:$0xff]  ;;  %v27_v35 = vld [vmem:[%s254_s0 + $0x68] sm:$0xff] }
   0x6   :  { %v63_v20 = vadd.f32 %v143_v2, %v40_v9  ;;  %v65_v25 = vadd.f32 %v143_v2, %v42_v15  ;;  %v66_v26 = vadd.f32 %v143_v2, %v43_v16  ;;  %v67_v33 = vadd.f32 %v143_v2, %v44_v21  ;;  %v26_v34 = vld [vmem:[%s254_s0 + $0x60] sm:$0xff]  ;;  %v28_v36 = vld [vmem:[%s254_s0 + $0x70] sm:$0xff]  ;;  %v29_v41 = vld [vmem:[%s254_s0 + $0x78] sm:$0xff] }
   0x7   :  { %v76_v23 = vmax.f32 %v60_v13, 0.0  ;;  %v64_v24 = vadd.f32 %v143_v2, %v41_v14  ;;  %v77_v30 = vmax.f32 %v61_v18, 0.0  ;;  %v78_v31 = vmax.f32 %v62_v19, 0.0 }
   0x8   :  { %v79_v32 = vmax.f32 %v63_v20, 0.0  ;;  %v81_v38 = vmax.f32 %v65_v25, 0.0  ;;  %v82_v39 = vmax.f32 %v66_v26, 0.0  ;;  %v45_v40 = vmul.f32 %v112_v1, %v22_v22 }
   0x9   :  { %92 = vst [vmem:[%s257_s3] sm:$0xff] %v76_v23  ;;  %v80_v37 = vmax.f32 %v64_v24, 0.0  ;;  %93 = vst [vmem:[%s257_s3 + $0x8] sm:$0xff] %v77_v30  ;;  %v83_v42 = vmax.f32 %v67_v33, 0.0  ;;  %v46_v43 = vmul.f32 %v112_v1, %v23_v27  ;;  %v47_v44 = vmul.f32 %v112_v1, %v24_v28 }
   0xa   :  { %94 = vst [vmem:[%s257_s3 + $0x10] sm:$0xff] %v78_v31  ;;  %95 = vst [vmem:[%s257_s3 + $0x18] sm:$0xff] %v79_v32  ;;  %v48_v45 = vmul.f32 %v112_v1, %v25_v29  ;;  %v68_v46 = vadd.f32 %v143_v2, %v45_v40  ;;  %v49_v47 = vmul.f32 %v112_v1, %v26_v34 }
   0xb   :  { %96 = vst [vmem:[%s257_s3 + $0x20] sm:$0xff] %v80_v37  ;;  %97 = vst [vmem:[%s257_s3 + $0x28] sm:$0xff] %v81_v38  ;;  %v50_v48 = vmul.f32 %v112_v1, %v27_v35  ;;  %v51_v49 = vmul.f32 %v112_v1, %v28_v36  ;;  %v69_v50 = vadd.f32 %v143_v2, %v46_v43 }
   0xc   :  { %98 = vst [vmem:[%s257_s3 + $0x30] sm:$0xff] %v82_v39  ;;  %99 = vst [vmem:[%s257_s3 + $0x38] sm:$0xff] %v83_v42  ;;  %v70_v51 = vadd.f32 %v143_v2, %v47_v44  ;;  %v71_v52 = vadd.f32 %v143_v2, %v48_v45  ;;  %v52_v53 = vmul.f32 %v112_v1, %v29_v41  ;;  %v84_v54 = vmax.f32 %v68_v46, 0.0 }
   0xd   :  { %v72_v55 = vadd.f32 %v143_v2, %v49_v47  ;;  %v73_v56 = vadd.f32 %v143_v2, %v50_v48  ;;  %v74_v57 = vadd.f32 %v143_v2, %v51_v49  ;;  %v85_v58 = vmax.f32 %v69_v50, 0.0 }
   0xe   :  { %v86_v59 = vmax.f32 %v70_v51, 0.0  ;;  %v87_v60 = vmax.f32 %v71_v52, 0.0  ;;  %v75_v61 = vadd.f32 %v143_v2, %v52_v53  ;;  %100 = vst [vmem:[%s257_s3 + $0x40] sm:$0xff] %v84_v54 }
   0xf   :  { %v88_v62 = vmax.f32 %v72_v55, 0.0  ;;  %v89_v63 = vmax.f32 %v73_v56, 0.0  ;;  %v90_v0 = vmax.f32 %v74_v57, 0.0  ;;  %101 = vst [vmem:[%s257_s3 + $0x48] sm:$0xff] %v85_v58 }
  0x10   :  { %102 = vst [vmem:[%s257_s3 + $0x50] sm:$0xff] %v86_v59  ;;  %103 = vst [vmem:[%s257_s3 + $0x58] sm:$0xff] %v87_v60  ;;  %v91_v1 = vmax.f32 %v75_v61, 0.0 }
  0x11   :  { %104 = vst [vmem:[%s257_s3 + $0x60] sm:$0xff] %v88_v62  ;;  %105 = vst [vmem:[%s257_s3 + $0x68] sm:$0xff] %v89_v63 }
  0x12   :  { %106 = vst [vmem:[%s257_s3 + $0x70] sm:$0xff] %v90_v0  ;;  %107 = vst [vmem:[%s257_s3 + $0x78] sm:$0xff] %v91_v1 }

// kernel: basic_block_forward.5
= control target key start
LH: loop header
LB: loop body
LE: loop exit
PB: predicated region body
PF: predicated region fallthrough
CT: control target
= control target key end

     0   :  { %s957_s15 = smov 0   ;;  %s1073_s0 = inlined_call_operand.vmem [shape: f32[2,9,9,16], index: 0, kind: input, shape index: {}]   ;;  %s1074_s1 = inlined_call_operand.vmem [shape: bf16[4,16,128], index: 1, kind: input, shape index: {}]   ;;  %s1075_s2 = inlined_call_operand.vmem [shape: f32[2,64,128], index: 2, kind: output, shape index: {0}]   ;;  %s1076_s3 = inlined_call_operand.vmem [shape: f32[2,1,128], index: 3, kind: output, shape index: {1}]   ;;  %s1077_s4 = inlined_call_operand.vmem [shape: f32[2,1,128], index: 4, kind: output, shape index: {2}]  }
   0x1 LB: > { %s814_s16 = sadd.s32 4294967295, %s930_s15   ;;  %p818_p0 = scmp.ge.s32.totalorder %s930_s15, 1  ;;  %s930_s15 = sphi %s957_s15, %s15_s15  }
   0x2   : > { %p167_p1 = scmp.lt.s32.totalorder %s930_s15, 3 }
   0x4   : > { %p168_p2 = pnand %p818_p0, %p167_p1 }
   0x5   : > { %p199_p3 = scmp.lt.s32.totalorder (!%p168_p2), %s814_s16, 1 }
   0x6   : > { %171 = sbr.rel (%p168_p2) target bundleno = 272 (0x110), region = 28 }
   0xb   : > { %v920_v0 = vld [vmem:[%s1074_s1] sm:$0xff]   ;;  %v921_v1 = vld [vmem:[%s1074_s1 + $0x8] sm:$0xff]   ;;  %s1079_s16 = smov (!%p199_p3, %s814_s16), 1  ;;  %v922_v2 = vld [vmem:[%s1074_s1 + $0x10] sm:$0xff]   ;;  %vm302_vm0 = vcmask 130048   ;;  %vm256_vm1 = vcmask 1046528  }
   0xc   : > { %881 = vmatprep.subr.bf16.mxu1 %v920_v0  ;;  %871 = vmatprep.subr.bf16.mxu0 %v921_v1  ;;  %s911_s23 = smul.u32 144, %s1079_s16  ;;  %v923_v3 = vld [vmem:[%s1074_s1 + $0x18] sm:$0xff]   ;;  %s850_s29 = sshll.u32 %s1079_s16, 6 }
   0xd   : > { %882 = vmatpush3.bf16.msra.mxu1 %v920_v0  ;;  %872 = vmatpush3.bf16.msra.mxu0 %v921_v1  ;;  %s1052_s6 = scalar_lea.vmem %s1075_s2, %s850_s29  ;;  %s211_s9 = scalar_lea.vmem %s1076_s3, %s1079_s16 }
   0xe   : > { %891 = vmatprep.subr.bf16.mxu0 %v922_v2  ;;  %s983_s28 = scalar_lea.vmem %s1073_s0, %s911_s23  ;;  %901 = vmatprep.subr.bf16.mxu1 %v923_v3  ;;  %s214_s12 = scalar_lea.vmem %s1077_s4, %s1079_s16 }
   0xf   : > { %v216_v4 = vld [vmem:[%s983_s28] sm:$0xff]  ;;  %v987_v5 = vld [vmem:[%s983_s28 + $0x10] sm:$0xff]  ;;  %v217_v11 = vld [vmem:[%s983_s28 + $0x8] sm:$0x1] }
  0x10   : > { %v990_v6 = vld [vmem:[%s983_s28 + $0x20] sm:$0xff]  ;;  %v234_v7 = vpack.c.bf16 %v987_v5, %v216_v4  ;;  %v257_v8 = vrot.slane %v216_v4, 1  ;;  %v260_v9 = vrot.slane %v987_v5, 1  ;;  %v995_v10 = vld [vmem:[%s983_s28 + $0x30] sm:$0xff]  ;;  %v219_v14 = vld [vmem:[%s983_s28 + $0x18] sm:$0x1] }
  0x11   : > { %v999_v12 = vld [vmem:[%s983_s28 + $0x40] sm:$0xff]  ;;  %v235_v13 = vpack.c.bf16 %v995_v10, %v990_v6  ;;  %v221_v15 = vld [vmem:[%s983_s28 + $0x28] sm:$0x1]  ;;  %v223_v16 = vld [vmem:[%s983_s28 + $0x38] sm:$0x1]  ;;  %v258_v18 = vrot.slane %v217_v11, 1  ;;  %v463_v53 = vpack.c.bf16 %v990_v6, %v987_v5 }
  0x12   : > { %883 = vmatprep.mubr.msk.bf16.mxu1 %vm302_vm0, %v234_v7  ;;  %v225_v17 = vld [vmem:[%s983_s28 + $0x48] sm:$0x1]  ;;  %v261_v19 = vrot.slane %v219_v14, 1  ;;  %v263_v20 = vrot.slane %v990_v6, 1  ;;  %v264_v21 = vrot.slane %v221_v15, 1  ;;  %v266_v22 = vrot.slane %v995_v10, 1 }
  0x13   : > { %884 = vmatmul.mubr.msk.bf16.vlgmr.msra.gmra.mxu1 %vm302_vm0, %v235_v13  ;;  %v267_v23 = vrot.slane %v223_v16, 1  ;;  %v269_v24 = vrot.slane %v999_v12, 1  ;;  %v270_v25 = vrot.slane %v225_v17, 1  ;;  %v226_v26 = vld [vmem:[%s983_s28 + $0x50] sm:$0xff]  ;;  %v228_v27 = vld [vmem:[%s983_s28 + $0x60] sm:$0xff]  ;;  %v259_v28 = vsel %vm256_vm1, %v257_v8, %v258_v18 }
  0x14   : > { %v262_v29 = vsel %vm256_vm1, %v260_v9, %v261_v19  ;;  %v265_v30 = vsel %vm256_vm1, %v263_v20, %v264_v21  ;;  %902 = vmatpush3.bf16.msra.mxu1 %v923_v3  ;;  %v236_v31 = vpack.c.bf16 %v226_v26, %v999_v12  ;;  %v230_v32 = vld [vmem:[%s983_s28 + $0x70] sm:$0xff]  ;;  %v227_v33 = vld [vmem:[%s983_s28 + $0x58] sm:$0x1]  ;;  %v229_v34 = vld [vmem:[%s983_s28 + $0x68] sm:$0x1]  ;;  %v272_v40 = vrot.slane %v226_v26, 1 }
  0x15   : > { %v268_v35 = vsel %vm256_vm1, %v266_v22, %v267_v23  ;;  %v289_v36 = vpack.c.bf16 %v262_v29, %v259_v28  ;;  %v231_v37 = vld [vmem:[%s983_s28 + $0x78] sm:$0x1]  ;;  %v271_v38 = vsel %vm256_vm1, %v269_v24, %v270_v25  ;;  %v237_v41 = vpack.c.bf16 %v230_v32, %v228_v27  ;;  %v232_v54 = vld [vmem:[%s983_s28 + $0x80] sm:$0xff]  ;;  %v233_v55 = vld [vmem:[%s983_s28 + $0x88] sm:$0x1] }
  0x16   : > { %v290_v39 = vpack.c.bf16 %v268_v35, %v265_v30  ;;  %887 = vmatprep.mubr.msk.bf16.mxu1 %vm302_vm0, %v236_v31  ;;  %v275_v42 = vrot.slane %v228_v27, 1  ;;  %v278_v43 = vrot.slane %v230_v32, 1  ;;  %v273_v44 = vrot.slane %v227_v33, 1 }
  0x17   : > { %873 = vmatprep.mubr.msk.bf16.mxu0 %vm302_vm0, %v289_v36  ;;  %v276_v45 = vrot.slane %v229_v34, 1  ;;  %v567_v46 = vpack.c.bf16 %v265_v30, %v262_v29  ;;  %v279_v47 = vrot.slane %v231_v37, 1  ;;  %v568_v56 = vpack.c.bf16 %v271_v38, %v268_v35 }
  0x18   : > { %874 = vmatmul.mubr.msk.bf16.vlgmr.msra.gmra.mxu0 %vm302_vm0, %v290_v39  ;;  %v274_v48 = vsel %vm256_vm1, %v272_v40, %v273_v44  ;;  %v563_v58 = vrot.slane %v232_v54, 1  ;;  %v564_v59 = vrot.slane %v233_v55, 1  ;;  %v464_v60 = vpack.c.bf16 %v999_v12, %v995_v10 }
  0x19   : > { %892 = vmatpush3.bf16.msra.mxu0 %v922_v2  ;;  %v277_v49 = vsel %vm256_vm1, %v275_v42, %v276_v45  ;;  %v291_v50 = vpack.c.bf16 %v274_v48, %v271_v38  ;;  %v280_v51 = vsel %vm256_vm1, %v278_v43, %v279_v47  ;;  %v465_v62 = vpack.c.bf16 %v228_v27, %v226_v26 }
  0x1a   : > { %v292_v52 = vpack.c.bf16 %v280_v51, %v277_v49  ;;  %v569_v57 = vpack.c.bf16 %v277_v49, %v274_v48  ;;  %v565_v61 = vsel %vm256_vm1, %v563_v58, %v564_v59  ;;  %v466_v0 = vpack.c.bf16 %v232_v54, %v230_v32 }
  0x1b   : > { %888 = vmatmul.mubr.msk.bf16.gmra.mxu1 %vm302_vm0, %v237_v41  ;;  %877 = vmatprep.mubr.msk.bf16.mxu0 %vm302_vm0, %v291_v50  ;;  %v570_v63 = vpack.c.bf16 %v565_v61, %v280_v51 }
  0x1c   : > { %903 = vmatprep.mubr.msk.bf16.mxu1 %vm302_vm0, %v567_v46 }
  0x20   : > { %878 = vmatmul.mubr.msk.bf16.gmra.mxu0 %vm302_vm0, %v292_v52 }
  0x21   : > { %893 = vmatprep.mubr.msk.bf16.mxu0 %vm302_vm0, %v463_v53 }
  0x23   : > { %904 = vmatmul.mubr.msk.bf16.vlgmr.msra.gmra.mxu1 %vm302_vm0, %v568_v56 }
  0x24   : > { %907 = vmatprep.mubr.msk.bf16.mxu1 %vm302_vm0, %v569_v57 }
  0x28   : > { %894 = vmatmul.mubr.msk.bf16.vlgmr.msra.gmra.mxu0 %vm302_vm0, %v464_v60 }
  0x29   : > { %897 = vmatprep.mubr.msk.bf16.mxu0 %vm302_vm0, %v465_v62 }
  0x2b   : > { %908 = vmatmul.mubr.msk.bf16.gmra.mxu1 %vm302_vm0, %v570_v63 }
  0x30   : > { %898 = vmatmul.mubr.msk.bf16.gmra.mxu0 %vm302_vm0, %v466_v0 }
  0xd3   : > { %v885_v1 = vpop.f32.mrf.mxu1 }
  0xd5   : > { %v432_v2 = vpop.f32.mrf.mxu1 }
  0xd7   : > { %v886_v3 = vpop.f32.mrf.mxu1 }
  0xd8   : > { %v875_v4 = vpop.f32.mrf.mxu0 }
  0xd9   : > { %v435_v5 = vpop.f32.mrf.mxu1  ;;  %v441_v19 = vadd.f32 %v885_v1, %v875_v4 }
  0xda   : > { %v349_v6 = vpop.f32.mrf.mxu0 }
  0xdb   : > { %v889_v7 = vpop.f32.mrf.mxu1  ;;  %v433_v22 = vadd.f32 %v432_v2, %v349_v6 }
  0xdc   : > { %v876_v8 = vpop.f32.mrf.mxu0 }
  0xdd   : > { %v448_v9 = vpop.f32.mrf.mxu1  ;;  %v444_v26 = vadd.f32 %v886_v3, %v876_v8 }
  0xde   : > { %v352_v10 = vpop.f32.mrf.mxu0 }
  0xdf   : > { %v890_v11 = vpop.f32.mrf.mxu1  ;;  %v436_v31 = vadd.f32 %v435_v5, %v352_v10 }
  0xe0   : > { %v879_v12 = vpop.f32.mrf.mxu0 }
  0xe1   : > { %v451_v13 = vpop.f32.mrf.mxu1  ;;  %v457_v35 = vadd.f32 %v889_v7, %v879_v12 }
  0xe2   : > { %v365_v14 = vpop.f32.mrf.mxu0 }
  0xe3   : > { %v905_v15 = vpop.f32.mrf.mxu1  ;;  %v449_v40 = vadd.f32 %v448_v9, %v365_v14 }
  0xe4   : > { %v880_v16 = vpop.f32.mrf.mxu0 }
  0xe5   : > { %v626_v17 = vpop.f32.mrf.mxu1  ;;  %v460_v49 = vadd.f32 %v890_v11, %v880_v16 }
  0xe6   : > { %v368_v18 = vpop.f32.mrf.mxu0 }
  0xe7   : > { %v906_v20 = vpop.f32.mrf.mxu1  ;;  %v452_v50 = vadd.f32 %v451_v13, %v368_v18 }
  0xe8   : > { %v895_v21 = vpop.f32.mrf.mxu0 }
  0xe9   : > { %v555_v23 = vadd.f32 %v895_v21, %v441_v19  ;;  %v629_v24 = vpop.f32.mrf.mxu1 }
  0xea   : > { %v522_v25 = vpop.f32.mrf.mxu0 }
  0xeb   : > { %v659_v27 = vadd.f32 %v905_v15, %v555_v23  ;;  %v553_v28 = vadd.f32 %v522_v25, %v433_v22  ;;  %v909_v30 = vpop.f32.mrf.mxu1 }
  0xec   : > { %v896_v29 = vpop.f32.mrf.mxu0 }
  0xed   : > { %667 = vst [vmem:[%s1052_s6 + $0x10] sm:$0xff] %v659_v27  ;;  %v657_v32 = vadd.f32 %v626_v17, %v553_v28  ;;  %v556_v33 = vadd.f32 %v896_v29, %v444_v26  ;;  %v642_v38 = vpop.f32.mrf.mxu1  ;;  %v689_v53 = vmul.f32 %v659_v27, %v659_v27 }
  0xee   : > { %v525_v34 = vpop.f32.mrf.mxu0 }
  0xef   : > { %665 = vst [vmem:[%s1052_s6] sm:$0xff] %v657_v32  ;;  %v660_v36 = vadd.f32 %v906_v20, %v556_v33  ;;  %v554_v37 = vadd.f32 %v525_v34, %v436_v31  ;;  %v687_v43 = vmul.f32 %v657_v32, %v657_v32  ;;  %v910_v51 = vpop.f32.mrf.mxu1 }
  0xf0   : > { %v899_v39 = vpop.f32.mrf.mxu0 }
  0xf1   : > { %668 = vst [vmem:[%s1052_s6 + $0x18] sm:$0xff] %v660_v36  ;;  %v658_v41 = vadd.f32 %v629_v24, %v554_v37  ;;  %v559_v42 = vadd.f32 %v899_v39, %v457_v35  ;;  %v690_v59 = vmul.f32 %v660_v36, %v660_v36  ;;  %v645_v63 = vpop.f32.mrf.mxu1 }
  0xf2   : > { %v538_v44 = vpop.f32.mrf.mxu0 }
  0xf3   : > { %666 = vst [vmem:[%s1052_s6 + $0x8] sm:$0xff] %v658_v41  ;;  %v673_v45 = vadd.f32 %v658_v41, %v657_v32  ;;  %v688_v46 = vmul.f32 %v658_v41, %v658_v41  ;;  %v663_v47 = vadd.f32 %v909_v30, %v559_v42  ;;  %v557_v48 = vadd.f32 %v538_v44, %v449_v40 }
  0xf4   : > { %v900_v52 = vpop.f32.mrf.mxu0 }
  0xf5   : > { %v674_v54 = vadd.f32 %v673_v45, %v659_v27  ;;  %v695_v55 = vadd.f32 %v688_v46, %v687_v43  ;;  %671 = vst [vmem:[%s1052_s6 + $0x30] sm:$0xff] %v663_v47  ;;  %v661_v56 = vadd.f32 %v642_v38, %v557_v48  ;;  %v560_v57 = vadd.f32 %v900_v52, %v460_v49 }
  0xf6   : > { %v541_v58 = vpop.f32.mrf.mxu0  ;;  %v693_v8 = vmul.f32 %v663_v47, %v663_v47 }
  0xf7   : > { %v696_v60 = vadd.f32 %v695_v55, %v689_v53  ;;  %669 = vst [vmem:[%s1052_s6 + $0x20] sm:$0xff] %v661_v56  ;;  %v675_v61 = vadd.f32 %v674_v54, %v660_v36  ;;  %v558_v62 = vadd.f32 %v541_v58, %v452_v50  ;;  %v664_v0 = vadd.f32 %v910_v51, %v560_v57 }
  0xf8   : > { %v691_v2 = vmul.f32 %v661_v56, %v661_v56 }
  0xf9   : > { %v676_v1 = vadd.f32 %v675_v61, %v661_v56  ;;  %v697_v3 = vadd.f32 %v696_v60, %v690_v59  ;;  %v662_v4 = vadd.f32 %v645_v63, %v558_v62  ;;  %672 = vst [vmem:[%s1052_s6 + $0x38] sm:$0xff] %v664_v0  ;;  %v694_v11 = vmul.f32 %v664_v0, %v664_v0 }
  0xfb   : > { %v698_v5 = vadd.f32 %v697_v3, %v691_v2  ;;  %670 = vst [vmem:[%s1052_s6 + $0x28] sm:$0xff] %v662_v4  ;;  %v677_v6 = vadd.f32 %v676_v1, %v662_v4  ;;  %v692_v7 = vmul.f32 %v662_v4, %v662_v4 }
  0xfd   : > { %v678_v9 = vadd.f32 %v677_v6, %v663_v47  ;;  %v699_v10 = vadd.f32 %v698_v5, %v692_v7 }
  0xff   : > { %v679_v12 = vadd.f32 %v678_v9, %v664_v0  ;;  %v700_v13 = vadd.f32 %v699_v10, %v693_v8 }
 0x101   : > { %v680_v14 = vrot.slane %v679_v12, 4  ;;  %v701_v15 = vadd.f32 %v700_v13, %v694_v11 }
 0x103   : > { %v681_v16 = vadd.f32 %v680_v14, %v679_v12  ;;  %v702_v17 = vrot.slane %v701_v15, 4 }
 0x105   : > { %v682_v18 = vrot.slane %v681_v16, 2  ;;  %v703_v19 = vadd.f32 %v702_v17, %v701_v15 }
 0x107   : > { %v683_v20 = vadd.f32 %v682_v18, %v681_v16  ;;  %v704_v21 = vrot.slane %v703_v19, 2 }
 0x109   : > { %v684_v22 = vrot.slane %v683_v20, 1  ;;  %v705_v23 = vadd.f32 %v704_v21, %v703_v19 }
 0x10b   : > { %v685_v24 = vadd.f32 %v684_v22, %v683_v20  ;;  %v706_v25 = vrot.slane %v705_v23, 1 }
 0x10d   : > { %686 = vst [vmem:[%s211_s9] sm:$0x1] %v685_v24  ;;  %v707_v26 = vadd.f32 %v706_v25, %v705_v23 }
 0x10f   : > { %708 = vst [vmem:[%s214_s12] sm:$0x1] %v707_v26 }
 0x110 PF: > { %s15_s15 = sadd.s32 1, %s930_s15  }
 0x111   : > { %p12_p4 = scmp.ge.s32.totalorder %s15_s15, 4  }
 0x113   :  { %14 = sbr.rel (!%p12_p4) target bundleno = 1 (0x1), region = 85 }

// kernel: basic_block_forward.7
= control target key start
LH: loop header
LB: loop body
LE: loop exit
PB: predicated region body
PF: predicated region fallthrough
CT: control target
= control target key end

     0   :  { %s2404_s15 = smov 0   ;;  %s2927_s0 = inlined_call_operand.vmem [shape: f32[2,10,10,128], index: 0, kind: input, shape index: {}]   ;;  %s2928_s1 = inlined_call_operand.vmem [shape: bf16[9,128,128], index: 1, kind: input, shape index: {}]   ;;  %s2929_s2 = inlined_call_operand.vmem [shape: f32[2,64,128], index: 2, kind: output, shape index: {0}]   ;;  %s2930_s3 = inlined_call_operand.vmem [shape: f32[2,1,128], index: 3, kind: output, shape index: {1}]   ;;  %s2931_s4 = inlined_call_operand.vmem [shape: f32[2,1,128], index: 4, kind: output, shape index: {2}]  }
   0x1 LB: > { %s1739_s16 = sadd.s32 4294967295, %s2377_s15   ;;  %p1743_p0 = scmp.ge.s32.totalorder %s2377_s15, 1  ;;  %s2377_s15 = sphi %s2404_s15, %s15_s15  }
   0x2   : > { %p167_p1 = scmp.lt.s32.totalorder %s2377_s15, 3 }
   0x4   : > { %p168_p2 = pnand %p1743_p0, %p167_p1 }
   0x6   : > { %171 = sbr.rel (%p168_p2) target bundleno = 402 (0x192), region = 28 }
   0xb   : > { %v2299_v0 = vld [vmem:[%s2928_s1 + $0x78] sm:$0xff]   ;;  %p199_p3 = scmp.lt.s32.totalorder %s1739_s16, 1  ;;  %v2301_v2 = vld [vmem:[%s2928_s1 + $0x70] sm:$0xff]   ;;  %v2303_v4 = vld [vmem:[%s2928_s1 + $0x68] sm:$0xff]   ;;  %vm272_vm0 = vcmask 1046528   ;;  %vm552_vm1 = vcmask 1045504  }
   0xc   : > { %v2300_v1 = vld [vmem:[%s2928_s1 + $0x38] sm:$0xff]   ;;  %2058 = vmatprep.subr.bf16.mxu0 %v2299_v0  ;;  %v2302_v3 = vld [vmem:[%s2928_s1 + $0x30] sm:$0xff]   ;;  %v2304_v5 = vld [vmem:[%s2928_s1 + $0x28] sm:$0xff]  }
   0xd   : > { %2082 = vmatprep.subr.bf16.mxu1 %v2300_v1  ;;  %2059 = vmatpush3.bf16.msra.mxu0 %v2299_v0  ;;  %s2947_s16 = smov (!%p199_p3, %s1739_s16), 1  ;;  %v2305_v6 = vld [vmem:[%s2928_s1 + $0x60] sm:$0xff]   ;;  %v2307_v8 = vld [vmem:[%s2928_s1 + $0x58] sm:$0xff]   ;;  %v2309_v10 = vld [vmem:[%s2928_s1 + $0x50] sm:$0xff]  }
   0xe   : > { %2083 = vmatpush3.bf16.msra.mxu1 %v2300_v1  ;;  %2060 = vmatprep.subr.bf16.mxu0 %v2301_v2  ;;  %v2306_v7 = vld [vmem:[%s2928_s1 + $0x20] sm:$0xff]   ;;  %s2290_s7 = smul.u32 160, %s2947_s16  ;;  %v2308_v9 = vld [vmem:[%s2928_s1 + $0x18] sm:$0xff]   ;;  %v2310_v14 = vld [vmem:[%s2928_s1 + $0x10] sm:$0xff]   ;;  %s1949_s22 = sshll.u32 %s2947_s16, 6 }
   0xf   : > { %2084 = vmatprep.subr.bf16.mxu1 %v2302_v3  ;;  %v2311_v18 = vld [vmem:[%s2928_s1 + $0x48] sm:$0xff]   ;;  %v2313_v34 = vld [vmem:[%s2928_s1 + $0x40] sm:$0xff]   ;;  %v2315_v38 = vld [vmem:[%s2928_s1 + $0xb8] sm:$0xff]   ;;  %s2903_s25 = scalar_lea.vmem %s2929_s2, %s1949_s22  ;;  %s211_s28 = scalar_lea.vmem %s2930_s3, %s2947_s16 }
  0x10   : > { %s2448_s14 = scalar_lea.vmem %s2927_s0, %s2290_s7  ;;  %v2312_v28 = vld [vmem:[%s2928_s1 + $0x8] sm:$0xff]   ;;  %v2314_v35 = vld [vmem:[%s2928_s1] sm:$0xff]   ;;  %v2316_v40 = vld [vmem:[%s2928_s1 + $0xf8] sm:$0xff]   ;;  %s214_s5 = scalar_lea.vmem %s2931_s4, %s2947_s16 }
  0x11   : > { %2061 = vmatpush3.bf16.msra.mxu0 %v2301_v2  ;;  %v2454_v11 = vld [vmem:[%s2448_s14] sm:$0xff]  ;;  %v2457_v12 = vld [vmem:[%s2448_s14 + $0x8] sm:$0x3]  ;;  %v2460_v13 = vld [vmem:[%s2448_s14 + $0x10] sm:$0xff] }
  0x12   : > { %2085 = vmatpush3.bf16.msra.mxu1 %v2302_v3  ;;  %2062 = vmatprep.subr.bf16.mxu0 %v2303_v4  ;;  %v2466_v15 = vld [vmem:[%s2448_s14 + $0x18] sm:$0x3]  ;;  %v273_v16 = vrot.slane %v2454_v11, 1  ;;  %v236_v17 = vpack.c.bf16 %v2460_v13, %v2454_v11  ;;  %v274_v19 = vrot.slane %v2457_v12, 1  ;;  %v276_v20 = vrot.slane %v2460_v13, 1  ;;  %v2478_v22 = vld [vmem:[%s2448_s14 + $0x20] sm:$0xff] }
  0x13   : > { %2086 = vmatprep.subr.bf16.mxu1 %v2304_v5  ;;  %v277_v21 = vrot.slane %v2466_v15, 1  ;;  %v2481_v23 = vld [vmem:[%s2448_s14 + $0x28] sm:$0x3]  ;;  %v2484_v24 = vld [vmem:[%s2448_s14 + $0x30] sm:$0xff]  ;;  %v2491_v27 = vld [vmem:[%s2448_s14 + $0x38] sm:$0x3] }
  0x14   : > { %2098 = vmatprep.mubr.bf16.mxu1 %v236_v17  ;;  %v275_v25 = vsel %vm272_vm0, %v273_v16, %v274_v19  ;;  %v279_v30 = vrot.slane %v2478_v22, 1  ;;  %v280_v31 = vrot.slane %v2481_v23, 1  ;;  %v282_v32 = vrot.slane %v2484_v24, 1  ;;  %v2317_v43 = vld [vmem:[%s2928_s1 + $0xb0] sm:$0xff]   ;;  %v2529_v44 = vld [vmem:[%s2448_s14 + $0x40] sm:$0xff]  ;;  %v2323_v17 = vld [vmem:[%s2928_s1 + $0x98] sm:$0xff]  }
  0x15   : > { %2063 = vmatpush3.bf16.msra.mxu0 %v2303_v4  ;;  %v2488_v26 = vsel %vm272_vm0, %v276_v20, %v277_v21  ;;  %v283_v33 = vrot.slane %v2491_v27, 1  ;;  %v554_v39 = vrot.slane %v2457_v12, 2  ;;  %v557_v41 = vrot.slane %v2466_v15, 2  ;;  %v2532_v45 = vld [vmem:[%s2448_s14 + $0x48] sm:$0x3]  ;;  %v2318_v48 = vld [vmem:[%s2928_s1 + $0xf0] sm:$0xff]  }
  0x16   : > { %2087 = vmatpush3.bf16.msra.mxu1 %v2304_v5  ;;  %2064 = vmatprep.subr.bf16.mxu0 %v2305_v6  ;;  %v305_v29 = vpack.c.bf16 %v2488_v26, %v275_v25  ;;  %v2508_v36 = vsel %vm272_vm0, %v279_v30, %v280_v31  ;;  %v553_v46 = vrot.slane %v2454_v11, 2  ;;  %v2537_v47 = vpack.c.bf16 %v2484_v24, %v2478_v22  ;;  %v2543_v49 = vld [vmem:[%s2448_s14 + $0x50] sm:$0xff]  ;;  %v2546_v50 = vld [vmem:[%s2448_s14 + $0x58] sm:$0x3]  ;;  %v2551_v53 = vld [vmem:[%s2448_s14 + $0x60] sm:$0xff] }
  0x17   : > { %2088 = vmatprep.subr.bf16.mxu1 %v2306_v7  ;;  %v2511_v37 = vsel %vm272_vm0, %v282_v32, %v283_v33  ;;  %v285_v51 = vrot.slane %v2529_v44, 1  ;;  %v286_v52 = vrot.slane %v2532_v45, 1  ;;  %v288_v54 = vrot.slane %v2543_v49, 1  ;;  %v2556_v56 = vld [vmem:[%s2448_s14 + $0x68] sm:$0x3]  ;;  %v2559_v57 = vld [vmem:[%s2448_s14 + $0x70] sm:$0xff] }
  0x18   : > { %2074 = vmatprep.mubr.bf16.mxu0 %v305_v29  ;;  %v2523_v42 = vpack.c.bf16 %v2511_v37, %v2508_v36  ;;  %v289_v55 = vrot.slane %v2546_v50, 1  ;;  %v291_v58 = vrot.slane %v2551_v53, 1  ;;  %v2566_v60 = vld [vmem:[%s2448_s14 + $0x78] sm:$0x3]  ;;  %v292_v61 = vrot.slane %v2556_v56, 1  ;;  %v2319_v5 = vld [vmem:[%s2928_s1 + $0xa8] sm:$0xff]  }
  0x19   : > { %2065 = vmatpush3.bf16.msra.mxu0 %v2305_v6  ;;  %v2563_v59 = vsel %vm272_vm0, %v285_v51, %v286_v52  ;;  %v294_v62 = vrot.slane %v2559_v57, 1  ;;  %v2576_v0 = vpack.c.bf16 %v2543_v49, %v2529_v44  ;;  %v295_v1 = vrot.slane %v2566_v60, 1  ;;  %v2321_v12 = vld [vmem:[%s2928_s1 + $0xa0] sm:$0xff]   ;;  %v2326_v19 = vld [vmem:[%s2928_s1 + $0xd0] sm:$0xff]   ;;  %v2327_v25 = vld [vmem:[%s2928_s1 + $0x88] sm:$0xff]  }
  0x1a   : > { %2089 = vmatpush3.bf16.msra.mxu1 %v2306_v7  ;;  %2066 = vmatprep.subr.bf16.mxu0 %v2307_v8  ;;  %v2572_v63 = vsel %vm272_vm0, %v288_v54, %v289_v55  ;;  %v556_v2 = vrot.slane %v2460_v13, 2  ;;  %v2586_v4 = vsel %vm272_vm0, %v291_v58, %v292_v61  ;;  %v2320_v7 = vld [vmem:[%s2928_s1 + $0xe8] sm:$0xff]   ;;  %v2609_v11 = vpack.c.bf16 %v2559_v57, %v2551_v53  ;;  %v2330_v33 = vld [vmem:[%s2928_s1 + $0xc0] sm:$0xff]   ;;  %v2687_v58 = vld [vmem:[%s2448_s14 + $0x90] sm:$0xff] }
  0x1b   : > { %2090 = vmatprep.subr.bf16.mxu1 %v2308_v9  ;;  %v2583_v3 = vpack.c.bf16 %v2572_v63, %v2563_v59  ;;  %v2592_v6 = vsel %vm272_vm0, %v294_v62, %v295_v1  ;;  %v727_v16 = vpack.c.bf16 %v2478_v22, %v2460_v13  ;;  %v2325_v13 = vld [vmem:[%s2928_s1 + $0x90] sm:$0xff]   ;;  %v559_v20 = vrot.slane %v2478_v22, 2  ;;  %v2328_v29 = vld [vmem:[%s2928_s1 + $0xc8] sm:$0xff]   ;;  %v235_v61 = vld [vmem:[%s2448_s14 + $0x98] sm:$0x3] }
  0x1c   : > { %v560_v21 = vrot.slane %v2481_v23, 2  ;;  %v562_v30 = vrot.slane %v2484_v24, 2  ;;  %v565_v22 = vrot.slane %v2529_v44, 2  ;;  %v566_v23 = vrot.slane %v2532_v45, 2 }
  0x1d   : > { %2067 = vmatpush3.bf16.msra.mxu0 %v2307_v8  ;;  %v2601_v8 = vpack.c.bf16 %v2592_v6, %v2586_v4  ;;  %v568_v31 = vrot.slane %v2543_v49, 2  ;;  %v569_v32 = vrot.slane %v2546_v50, 2  ;;  %v574_v55 = vrot.slane %v2559_v57, 2 }
  0x1e   : > { %2091 = vmatpush3.bf16.msra.mxu1 %v2308_v9  ;;  %2068 = vmatprep.subr.bf16.mxu0 %v2309_v10  ;;  %v555_v9 = vsel %vm552_vm1, %v553_v46, %v554_v39  ;;  %v2331_v39 = vld [vmem:[%s2928_s1 + $0x138] sm:$0xff]   ;;  %v233_v46 = vld [vmem:[%s2448_s14 + $0x88] sm:$0x3]  ;;  %v2678_v50 = vsel %vm552_vm1, %v565_v22, %v566_v23  ;;  %v728_v1 = vpack.c.bf16 %v2529_v44, %v2484_v24  ;;  %v2334_v24 = vld [vmem:[%s2928_s1 + $0x170] sm:$0xff]  }
  0x1f   : > { %2092 = vmatprep.subr.bf16.mxu1 %v2310_v14  ;;  %v872_v51 = vrot.slane %v233_v46, 1  ;;  %v2682_v54 = vsel %vm552_vm1, %v568_v31, %v569_v32  ;;  %v1018_v62 = vrot.slane %v233_v46, 2  ;;  %v2338_v22 = vld [vmem:[%s2928_s1 + $0x160] sm:$0xff]   ;;  %v2343_v31 = vld [vmem:[%s2928_s1 + $0x108] sm:$0xff]   ;;  %v877_v46 = vpack.c.bf16 %v2586_v4, %v2572_v63 }
  0x20   : > { %v2707_v44 = vpack.c.bf16 %v2682_v54, %v2678_v50  ;;  %v2345_v32 = vld [vmem:[%s2928_s1 + $0x100] sm:$0xff]  }
  0x21   : > { %2069 = vmatpush3.bf16.msra.mxu0 %v2309_v10  ;;  %v2605_v10 = vsel %vm552_vm1, %v556_v2, %v557_v41  ;;  %v2666_v41 = vld [vmem:[%s2448_s14 + $0x80] sm:$0xff] }
  0x22   : > { %2093 = vmatpush3.bf16.msra.mxu1 %v2310_v14  ;;  %2070 = vmatprep.subr.bf16.mxu0 %v2311_v18  ;;  %v2322_v14 = vld [vmem:[%s2928_s1 + $0xe0] sm:$0xff]   ;;  %v585_v15 = vpack.c.bf16 %v2605_v10, %v555_v9  ;;  %v871_v45 = vrot.slane %v2666_v41, 1  ;;  %v1017_v52 = vrot.slane %v2666_v41, 2 }
  0x23   : > { %2094 = vmatprep.subr.bf16.mxu1 %v2312_v28  ;;  %v2353_v4 = vld [vmem:[%s2928_s1 + $0x1a0] sm:$0xff]  }
  0x24   : > { %v2693_v2 = vsel %vm272_vm0, %v871_v45, %v872_v51  ;;  %v2350_v45 = vld [vmem:[%s2928_s1 + $0x1f0] sm:$0xff]   ;;  %v2355_v51 = vld [vmem:[%s2928_s1 + $0x198] sm:$0xff]  }
  0x25   : > { %2071 = vmatpush3.bf16.msra.mxu0 %v2311_v18  ;;  %v2324_v18 = vld [vmem:[%s2928_s1 + $0xd8] sm:$0xff]   ;;  %v878_v9 = vpack.c.bf16 %v2693_v2, %v2592_v6  ;;  %v2357_v6 = vld [vmem:[%s2928_s1 + $0x190] sm:$0xff]  }
  0x26   : > { %2095 = vmatpush3.bf16.msra.mxu1 %v2312_v28  ;;  %2072 = vmatprep.subr.bf16.mxu0 %v2313_v34  ;;  %v563_v28 = vrot.slane %v2491_v27, 2  ;;  %v2329_v27 = vld [vmem:[%s2928_s1 + $0x80] sm:$0xff]  }
  0x27   : > { %2096 = vmatprep.subr.bf16.mxu1 %v2314_v35 }
  0x29   : > { %2073 = vmatpush3.bf16.msra.mxu0 %v2313_v34  ;;  %v571_v34 = vrot.slane %v2551_v53, 2 }
  0x2a   : > { %2097 = vmatpush3.bf16.msra.mxu1 %v2314_v35  ;;  %2106 = vmatprep.subr.bf16.mxu0 %v2315_v38  ;;  %v2656_v35 = vsel %vm552_vm1, %v559_v20, %v560_v21  ;;  %v2336_v21 = vld [vmem:[%s2928_s1 + $0x168] sm:$0xff]  }
  0x2b   : > { %2130 = vmatprep.subr.bf16.mxu1 %v2316_v40  ;;  %v1021_v23 = vpack.c.bf16 %v2656_v35, %v2605_v10  ;;  %v2342_v10 = vld [vmem:[%s2928_s1 + $0x150] sm:$0xff]  }
  0x2c   : > { %2075 = vmatmul.mubr.bf16.vlgmr.msra.gmra.mxu0 %v2523_v42 }
  0x2d   : > { %2099 = vmatmul.mubr.bf16.vlgmr.msra.gmra.mxu1 %v2537_v47  ;;  %2107 = vmatpush3.bf16.msra.mxu0 %v2315_v38  ;;  %v2659_v38 = vsel %vm552_vm1, %v562_v30, %v563_v28  ;;  %v730_v28 = vpack.c.bf16 %v2666_v41, %v2559_v57  ;;  %v875_v30 = vpack.c.bf16 %v2508_v36, %v2488_v26  ;;  %v2339_v57 = vld [vmem:[%s2928_s1 + $0x118] sm:$0xff]   ;;  %v2341_v36 = vld [vmem:[%s2928_s1 + $0x110] sm:$0xff]  }
  0x2e   : > { %2131 = vmatpush3.bf16.msra.mxu1 %v2316_v40  ;;  %2108 = vmatprep.subr.bf16.mxu0 %v2317_v43  ;;  %v572_v40 = vrot.slane %v2556_v56, 2  ;;  %v575_v56 = vrot.slane %v2566_v60, 2  ;;  %v2333_v60 = vld [vmem:[%s2928_s1 + $0x130] sm:$0xff]   ;;  %v2340_v26 = vld [vmem:[%s2928_s1 + $0x158] sm:$0xff]  }
  0x2f   : > { %2132 = vmatprep.subr.bf16.mxu1 %v2318_v48  ;;  %2078 = vmatprep.mubr.bf16.mxu0 %v2583_v3 }
  0x30   : > { %2102 = vmatprep.mubr.bf16.mxu1 %v2576_v0 }
  0x31   : > { %2109 = vmatpush3.bf16.msra.mxu0 %v2317_v43  ;;  %v2332_v43 = vld [vmem:[%s2928_s1 + $0x178] sm:$0xff]  }
  0x32   : > { %2133 = vmatpush3.bf16.msra.mxu1 %v2318_v48  ;;  %2110 = vmatprep.subr.bf16.mxu0 %v2319_v5  ;;  %v2675_v48 = vpack.c.bf16 %v2659_v38, %v2656_v35  ;;  %v2348_v35 = vld [vmem:[%s2928_s1 + $0x1f8] sm:$0xff]  }
  0x33   : > { %2134 = vmatprep.subr.bf16.mxu1 %v2320_v7 }
  0x34   : > { %2079 = vmatmul.mubr.bf16.gmra.mxu0 %v2601_v8 }
  0x35   : > { %2111 = vmatpush3.bf16.msra.mxu0 %v2319_v5  ;;  %2103 = vmatmul.mubr.bf16.gmra.mxu1 %v2609_v11  ;;  %v1447_v5 = vrot.slane %v2687_v58, 2 }
  0x36   : > { %2135 = vmatpush3.bf16.msra.mxu1 %v2320_v7  ;;  %2112 = vmatprep.subr.bf16.mxu0 %v2321_v12  ;;  %v1448_v7 = vrot.slane %v235_v61, 2 }
  0x37   : > { %2136 = vmatprep.subr.bf16.mxu1 %v2322_v14  ;;  %2122 = vmatprep.mubr.bf16.mxu0 %v585_v15 }
  0x38   : > { %2146 = vmatprep.mubr.bf16.mxu1 %v727_v16  ;;  %v2713_v15 = vsel %vm552_vm1, %v1447_v5, %v1448_v7  ;;  %v1305_v16 = vrot.slane %v235_v61, 1  ;;  %v2363_v61 = vld [vmem:[%s2928_s1 + $0x238] sm:$0xff]   ;;  %v1163_v5 = vpack.c.bf16 %v2687_v58, %v2666_v41  ;;  %v2370_v41 = vld [vmem:[%s2928_s1 + $0x200] sm:$0xff]  }
  0x39   : > { %2113 = vmatpush3.bf16.msra.mxu0 %v2321_v12  ;;  %v1304_v12 = vrot.slane %v2687_v58, 1 }
  0x3a   : > { %2137 = vmatpush3.bf16.msra.mxu1 %v2322_v14  ;;  %2114 = vmatprep.subr.bf16.mxu0 %v2323_v17  ;;  %v2710_v14 = vsel %vm552_vm1, %v1017_v52, %v1018_v62  ;;  %v2356_v52 = vld [vmem:[%s2928_s1 + $0x1d8] sm:$0xff]   ;;  %v2364_v62 = vld [vmem:[%s2928_s1 + $0x230] sm:$0xff]  }
  0x3b   : > { %2138 = vmatprep.subr.bf16.mxu1 %v2324_v18  ;;  %v2727_v20 = vsel %vm272_vm0, %v1304_v12, %v1305_v16 }
  0x3d   : > { %2115 = vmatpush3.bf16.msra.mxu0 %v2323_v17  ;;  %v729_v17 = vpack.c.bf16 %v2551_v53, %v2543_v49  ;;  %v2335_v49 = vld [vmem:[%s2928_s1 + $0x128] sm:$0xff]   ;;  %v1308_v53 = vpack.c.bf16 %v2727_v20, %v2693_v2 }
  0x3e   : > { %2139 = vmatpush3.bf16.msra.mxu1 %v2324_v18  ;;  %2116 = vmatprep.subr.bf16.mxu0 %v2325_v13  ;;  %v1451_v18 = vpack.c.bf16 %v2713_v15, %v2710_v14 }
  0x3f   : > { %2140 = vmatprep.subr.bf16.mxu1 %v2326_v19 }
  0x41   : > { %2117 = vmatpush3.bf16.msra.mxu0 %v2325_v13  ;;  %v2721_v13 = vsel %vm552_vm1, %v571_v34, %v572_v40  ;;  %v2347_v34 = vld [vmem:[%s2928_s1 + $0x1b8] sm:$0xff]   ;;  %v1022_v40 = vpack.c.bf16 %v2678_v50, %v2659_v38  ;;  %v2352_v38 = vld [vmem:[%s2928_s1 + $0x1e8] sm:$0xff]   ;;  %v2354_v50 = vld [vmem:[%s2928_s1 + $0x1e0] sm:$0xff]  }
  0x42   : > { %2141 = vmatpush3.bf16.msra.mxu1 %v2326_v19  ;;  %2118 = vmatprep.subr.bf16.mxu0 %v2327_v25  ;;  %v2724_v19 = vsel %vm552_vm1, %v574_v55, %v575_v56  ;;  %v2361_v55 = vld [vmem:[%s2928_s1 + $0x180] sm:$0xff]  }
  0x43   : > { %2142 = vmatprep.subr.bf16.mxu1 %v2328_v29  ;;  %v1024_v63 = vpack.c.bf16 %v2710_v14, %v2724_v19  ;;  %v2362_v56 = vld [vmem:[%s2928_s1 + $0x1c0] sm:$0xff]  }
  0x45   : > { %2119 = vmatpush3.bf16.msra.mxu0 %v2327_v25  ;;  %v2740_v25 = vpack.c.bf16 %v2724_v19, %v2721_v13 }
  0x46   : > { %2143 = vmatpush3.bf16.msra.mxu1 %v2328_v29  ;;  %2120 = vmatprep.subr.bf16.mxu0 %v2329_v27  ;;  %v2337_v29 = vld [vmem:[%s2928_s1 + $0x120] sm:$0xff]  }
  0x47   : > { %2144 = vmatprep.subr.bf16.mxu1 %v2330_v33 }
  0x49   : > { %2121 = vmatpush3.bf16.msra.mxu0 %v2329_v27  ;;  %v2344_v27 = vld [vmem:[%s2928_s1 + $0x148] sm:$0xff]  }
  0x4a   : > { %2145 = vmatpush3.bf16.msra.mxu1 %v2330_v33  ;;  %2154 = vmatprep.subr.bf16.mxu0 %v2331_v39  ;;  %v2346_v33 = vld [vmem:[%s2928_s1 + $0x140] sm:$0xff]  }
  0x4b   : > { %2178 = vmatprep.subr.bf16.mxu1 %v2332_v43 }
  0x4c   : > { %2123 = vmatmul.mubr.bf16.vlgmr.msra.gmra.mxu0 %v2675_v48 }
  0x4d   : > { %2147 = vmatmul.mubr.bf16.vlgmr.msra.gmra.mxu1 %v728_v1  ;;  %2155 = vmatpush3.bf16.msra.mxu0 %v2331_v39  ;;  %v876_v39 = vpack.c.bf16 %v2563_v59, %v2511_v37  ;;  %v1023_v37 = vpack.c.bf16 %v2721_v13, %v2682_v54  ;;  %v2351_v59 = vld [vmem:[%s2928_s1 + $0x1a8] sm:$0xff]   ;;  %v2358_v54 = vld [vmem:[%s2928_s1 + $0x1d0] sm:$0xff]  }
  0x4e   : > { %2179 = vmatpush3.bf16.msra.mxu1 %v2332_v43  ;;  %2156 = vmatprep.subr.bf16.mxu0 %v2333_v60  ;;  %v2349_v43 = vld [vmem:[%s2928_s1 + $0x1b0] sm:$0xff]   ;;  %v2365_v1 = vld [vmem:[%s2928_s1 + $0x228] sm:$0xff]  }
  0x4f   : > { %2180 = vmatprep.subr.bf16.mxu1 %v2334_v24  ;;  %2126 = vmatprep.mubr.bf16.mxu0 %v2707_v44 }
  0x50   : > { %2150 = vmatprep.mubr.bf16.mxu1 %v729_v17 }
  0x51   : > { %2157 = vmatpush3.bf16.msra.mxu0 %v2333_v60 }
  0x52   : > { %2181 = vmatpush3.bf16.msra.mxu1 %v2334_v24  ;;  %2158 = vmatprep.subr.bf16.mxu0 %v2335_v49 }
  0x53   : > { %2182 = vmatprep.subr.bf16.mxu1 %v2336_v21 }
  0x54   : > { %2127 = vmatmul.mubr.bf16.gmra.mxu0 %v2740_v25 }
  0x55   : > { %2159 = vmatpush3.bf16.msra.mxu0 %v2335_v49  ;;  %2151 = vmatmul.mubr.bf16.gmra.mxu1 %v730_v28 }
  0x56   : > { %2183 = vmatpush3.bf16.msra.mxu1 %v2336_v21  ;;  %2160 = vmatprep.subr.bf16.mxu0 %v2337_v29 }
  0x57   : > { %2184 = vmatprep.subr.bf16.mxu1 %v2338_v22  ;;  %2170 = vmatprep.mubr.bf16.mxu0 %v875_v30 }
  0x58   : > { %2194 = vmatprep.mubr.bf16.mxu1 %v1021_v23 }
  0x59   : > { %2161 = vmatpush3.bf16.msra.mxu0 %v2337_v29 }
  0x5a   : > { %2185 = vmatpush3.bf16.msra.mxu1 %v2338_v22  ;;  %2162 = vmatprep.subr.bf16.mxu0 %v2339_v57 }
  0x5b   : > { %2186 = vmatprep.subr.bf16.mxu1 %v2340_v26 }
  0x5d   : > { %2163 = vmatpush3.bf16.msra.mxu0 %v2339_v57 }
  0x5e   : > { %2187 = vmatpush3.bf16.msra.mxu1 %v2340_v26  ;;  %2164 = vmatprep.subr.bf16.mxu0 %v2341_v36 }
  0x5f   : > { %2188 = vmatprep.subr.bf16.mxu1 %v2342_v10 }
  0x61   : > { %2165 = vmatpush3.bf16.msra.mxu0 %v2341_v36 }
  0x62   : > { %2189 = vmatpush3.bf16.msra.mxu1 %v2342_v10  ;;  %2166 = vmatprep.subr.bf16.mxu0 %v2343_v31 }
  0x63   : > { %2190 = vmatprep.subr.bf16.mxu1 %v2344_v27 }
  0x65   : > { %2167 = vmatpush3.bf16.msra.mxu0 %v2343_v31 }
  0x66   : > { %2191 = vmatpush3.bf16.msra.mxu1 %v2344_v27  ;;  %2168 = vmatprep.subr.bf16.mxu0 %v2345_v32 }
  0x67   : > { %2192 = vmatprep.subr.bf16.mxu1 %v2346_v33 }
  0x69   : > { %2169 = vmatpush3.bf16.msra.mxu0 %v2345_v32 }
  0x6a   : > { %2193 = vmatpush3.bf16.msra.mxu1 %v2346_v33  ;;  %2202 = vmatprep.subr.bf16.mxu0 %v2347_v34 }
  0x6b   : > { %2226 = vmatprep.subr.bf16.mxu1 %v2348_v35 }
  0x6c   : > { %2171 = vmatmul.mubr.bf16.vlgmr.msra.gmra.mxu0 %v876_v39 }
  0x6d   : > { %2195 = vmatmul.mubr.bf16.vlgmr.msra.gmra.mxu1 %v1022_v40  ;;  %2203 = vmatpush3.bf16.msra.mxu0 %v2347_v34 }
  0x6e   : > { %2227 = vmatpush3.bf16.msra.mxu1 %v2348_v35  ;;  %2204 = vmatprep.subr.bf16.mxu0 %v2349_v43 }
  0x6f   : > { %2228 = vmatprep.subr.bf16.mxu1 %v2350_v45  ;;  %2174 = vmatprep.mubr.bf16.mxu0 %v877_v46 }
  0x70   : > { %2198 = vmatprep.mubr.bf16.mxu1 %v1023_v37 }
  0x71   : > { %2205 = vmatpush3.bf16.msra.mxu0 %v2349_v43 }
  0x72   : > { %2229 = vmatpush3.bf16.msra.mxu1 %v2350_v45  ;;  %2206 = vmatprep.subr.bf16.mxu0 %v2351_v59 }
  0x73   : > { %2230 = vmatprep.subr.bf16.mxu1 %v2352_v38 }
  0x74   : > { %2175 = vmatmul.mubr.bf16.gmra.mxu0 %v878_v9 }
  0x75   : > { %2207 = vmatpush3.bf16.msra.mxu0 %v2351_v59  ;;  %2199 = vmatmul.mubr.bf16.gmra.mxu1 %v1024_v63 }
  0x76   : > { %2231 = vmatpush3.bf16.msra.mxu1 %v2352_v38  ;;  %2208 = vmatprep.subr.bf16.mxu0 %v2353_v4 }
  0x77   : > { %2232 = vmatprep.subr.bf16.mxu1 %v2354_v50  ;;  %2218 = vmatprep.mubr.bf16.mxu0 %v2537_v47  ;;  %v2359_v47 = vld [vmem:[%s2928_s1 + $0x188] sm:$0xff]  }
  0x78   : > { %2242 = vmatprep.mubr.bf16.mxu1 %v2523_v42  ;;  %v2360_v42 = vld [vmem:[%s2928_s1 + $0x1c8] sm:$0xff]  }
  0x79   : > { %2209 = vmatpush3.bf16.msra.mxu0 %v2353_v4 }
  0x7a   : > { %2233 = vmatpush3.bf16.msra.mxu1 %v2354_v50  ;;  %2210 = vmatprep.subr.bf16.mxu0 %v2355_v51 }
  0x7b   : > { %2234 = vmatprep.subr.bf16.mxu1 %v2356_v52 }
  0x7d   : > { %2211 = vmatpush3.bf16.msra.mxu0 %v2355_v51 }
  0x7e   : > { %2235 = vmatpush3.bf16.msra.mxu1 %v2356_v52  ;;  %2212 = vmatprep.subr.bf16.mxu0 %v2357_v6 }
  0x7f   : > { %2236 = vmatprep.subr.bf16.mxu1 %v2358_v54 }
  0x81   : > { %2213 = vmatpush3.bf16.msra.mxu0 %v2357_v6 }
  0x82   : > { %2237 = vmatpush3.bf16.msra.mxu1 %v2358_v54  ;;  %2214 = vmatprep.subr.bf16.mxu0 %v2359_v47 }
  0x83   : > { %2238 = vmatprep.subr.bf16.mxu1 %v2360_v42 }
  0x85   : > { %2215 = vmatpush3.bf16.msra.mxu0 %v2359_v47 }
  0x86   : > { %2239 = vmatpush3.bf16.msra.mxu1 %v2360_v42  ;;  %2216 = vmatprep.subr.bf16.mxu0 %v2361_v55 }
  0x87   : > { %2240 = vmatprep.subr.bf16.mxu1 %v2362_v56 }
  0x89   : > { %2217 = vmatpush3.bf16.msra.mxu0 %v2361_v55 }
  0x8a   : > { %2241 = vmatpush3.bf16.msra.mxu1 %v2362_v56  ;;  %2250 = vmatprep.subr.bf16.mxu0 %v2363_v61 }
  0x8b   : > { %2274 = vmatprep.subr.bf16.mxu1 %v2363_v61 }
  0x8c   : > { %2219 = vmatmul.mubr.bf16.vlgmr.msra.gmra.mxu0 %v2576_v0  ;;  %v2366_v0 = vld [vmem:[%s2928_s1 + $0x220] sm:$0xff]  }
  0x8d   : > { %2243 = vmatmul.mubr.bf16.vlgmr.msra.gmra.mxu1 %v2583_v3  ;;  %2251 = vmatpush3.bf16.msra.mxu0 %v2363_v61  ;;  %v2367_v3 = vld [vmem:[%s2928_s1 + $0x218] sm:$0xff]  }
  0x8e   : > { %2282 = vmatpush3.bf16.msra.mxu1 %v2363_v61  ;;  %2252 = vmatprep.subr.bf16.mxu0 %v2364_v62 }
  0x8f   : > { %2275 = vmatprep.subr.bf16.mxu1 %v2364_v62  ;;  %2222 = vmatprep.mubr.bf16.mxu0 %v2609_v11  ;;  %v2369_v11 = vld [vmem:[%s2928_s1 + $0x208] sm:$0xff]  }
  0x90   : > { %2246 = vmatprep.mubr.bf16.mxu1 %v2601_v8  ;;  %v2368_v8 = vld [vmem:[%s2928_s1 + $0x210] sm:$0xff]  }
  0x91   : > { %2253 = vmatpush3.bf16.msra.mxu0 %v2364_v62 }
  0x92   : > { %2283 = vmatpush3.bf16.msra.mxu1 %v2364_v62  ;;  %2254 = vmatprep.subr.bf16.mxu0 %v2365_v1 }
  0x93   : > { %2276 = vmatprep.subr.bf16.mxu1 %v2365_v1 }
  0x94   : > { %2223 = vmatmul.mubr.bf16.gmra.mxu0 %v1163_v5 }
  0x95   : > { %2255 = vmatpush3.bf16.msra.mxu0 %v2365_v1  ;;  %2247 = vmatmul.mubr.bf16.gmra.mxu1 %v1308_v53 }
  0x96   : > { %2284 = vmatpush3.bf16.msra.mxu1 %v2365_v1  ;;  %2256 = vmatprep.subr.bf16.mxu0 %v2366_v0 }
  0x97   : > { %2277 = vmatprep.subr.bf16.mxu1 %v2366_v0  ;;  %2266 = vmatprep.mubr.bf16.mxu0 %v2675_v48 }
  0x98   : > { %2270 = vmatprep.mubr.bf16.mxu1 %v2740_v25 }
  0x99   : > { %2257 = vmatpush3.bf16.msra.mxu0 %v2366_v0 }
  0x9a   : > { %2285 = vmatpush3.bf16.msra.mxu1 %v2366_v0  ;;  %2258 = vmatprep.subr.bf16.mxu0 %v2367_v3 }
  0x9b   : > { %2278 = vmatprep.subr.bf16.mxu1 %v2367_v3 }
  0x9d   : > { %2259 = vmatpush3.bf16.msra.mxu0 %v2367_v3 }
  0x9e   : > { %2286 = vmatpush3.bf16.msra.mxu1 %v2367_v3  ;;  %2260 = vmatprep.subr.bf16.mxu0 %v2368_v8 }
  0x9f   : > { %2279 = vmatprep.subr.bf16.mxu1 %v2368_v8 }
  0xa1   : > { %2261 = vmatpush3.bf16.msra.mxu0 %v2368_v8 }
  0xa2   : > { %2287 = vmatpush3.bf16.msra.mxu1 %v2368_v8  ;;  %2262 = vmatprep.subr.bf16.mxu0 %v2369_v11 }
  0xa3   : > { %2280 = vmatprep.subr.bf16.mxu1 %v2369_v11 }
  0xa5   : > { %2263 = vmatpush3.bf16.msra.mxu0 %v2369_v11 }
  0xa6   : > { %2288 = vmatpush3.bf16.msra.mxu1 %v2369_v11  ;;  %2264 = vmatprep.subr.bf16.mxu0 %v2370_v41 }
  0xa7   : > { %2281 = vmatprep.subr.bf16.mxu1 %v2370_v41 }
  0xa9   : > { %2265 = vmatpush3.bf16.msra.mxu0 %v2370_v41 }
  0xaa   : > { %2289 = vmatpush3.bf16.msra.mxu1 %v2370_v41 }
  0xac   : > { %2267 = vmatmul.mubr.bf16.vlgmr.msra.gmra.mxu0 %v2707_v44 }
  0xad   : > { %2271 = vmatmul.mubr.bf16.vlgmr.msra.gmra.mxu1 %v1451_v18 }
  0xec   : > { %v2076_v48 = vpop.f32.mrf.mxu0 }
  0xed   : > { %v2100_v58 = vpop.f32.mrf.mxu1 }
  0xee   : > { %v408_v2 = vpop.f32.mrf.mxu0  ;;  %v530_v56 = vadd.f32 %v2100_v58, %v2076_v48 }
  0xef   : > { %v521_v7 = vpop.f32.mrf.mxu1 }
  0xf0   : > { %v2077_v60 = vpop.f32.mrf.mxu0  ;;  %v522_v1 = vadd.f32 %v521_v7, %v408_v2 }
  0xf1   : > { %v2101_v9 = vpop.f32.mrf.mxu1 }
  0xf2   : > { %v411_v12 = vpop.f32.mrf.mxu0  ;;  %v533_v11 = vadd.f32 %v2101_v9, %v2077_v60 }
  0xf3   : > { %v524_v24 = vpop.f32.mrf.mxu1 }
  0xf4   : > { %v2080_v16 = vpop.f32.mrf.mxu0 }
  0xf5   : > { %v2104_v17 = vpop.f32.mrf.mxu1 }
  0xf6   : > { %v424_v13 = vpop.f32.mrf.mxu0  ;;  %v546_v61 = vadd.f32 %v2104_v17, %v2080_v16 }
  0xf7   : > { %v537_v19 = vpop.f32.mrf.mxu1 }
  0xf8   : > { %v2081_v20 = vpop.f32.mrf.mxu0  ;;  %v538_v3 = vadd.f32 %v537_v19, %v424_v13 }
  0xf9   : > { %v2105_v49 = vpop.f32.mrf.mxu1 }
  0xfa   : > { %v427_v53 = vpop.f32.mrf.mxu0 }
  0xfb   : > { %v540_v44 = vpop.f32.mrf.mxu1 }
  0xfc   : > { %v541_v58 = vadd.f32 %v540_v44, %v427_v53 }
 0x10c   : > { %v2124_v21 = vpop.f32.mrf.mxu0 }
 0x10d   : > { %v2148_v25 = vpop.f32.mrf.mxu1  ;;  %v721_v5 = vadd.f32 %v2124_v21, %v530_v56 }
 0x10e   : > { %v688_v14 = vpop.f32.mrf.mxu0 }
 0x10f   : > { %v830_v15 = vpop.f32.mrf.mxu1  ;;  %v719_v41 = vadd.f32 %v688_v14, %v522_v1 }
 0x110   : > { %v2125_v18 = vpop.f32.mrf.mxu0 }
 0x111   : > { %v2149_v28 = vpop.f32.mrf.mxu1  ;;  %v861_v2 = vadd.f32 %v830_v15, %v719_v41 }
 0x112   : > { %v691_v29 = vpop.f32.mrf.mxu0 }
 0x113   : > { %v2881_v30 = vpop.f32.mrf.mxu1 }
 0x114   : > { %2932 = vst [vmem:[#allocation2_spill] sm:$0xff] %v2881_v30  ;;  %v2128_v22 = vpop.f32.mrf.mxu0  ;;  %v525_v30 = vadd.f32 %v524_v24, %v411_v12 }
 0x115   : > { %v2152_v23 = vpop.f32.mrf.mxu1  ;;  %v725_v8 = vadd.f32 %v2128_v22, %v546_v61 }
 0x116   : > { %v704_v57 = vpop.f32.mrf.mxu0  ;;  %v720_v7 = vadd.f32 %v691_v29, %v525_v30 }
 0x117   : > { %v846_v26 = vpop.f32.mrf.mxu1  ;;  %v867_v16 = vadd.f32 %v2152_v23, %v725_v8 }
 0x118   : > { %v2129_v36 = vpop.f32.mrf.mxu0 }
 0x119   : > { %v2153_v10 = vpop.f32.mrf.mxu1 }
 0x11a   : > { %v707_v31 = vpop.f32.mrf.mxu0 }
 0x11b   : > { %v849_v27 = vpop.f32.mrf.mxu1  ;;  %v2939_v14 = vld [vmem:[#allocation2_spill] sm:$0xff] }
 0x11c   : > { %v862_v12 = vadd.f32 %v2939_v14, %v720_v7 }
 0x12c   : > { %v2172_v32 = vpop.f32.mrf.mxu0 }
 0x12d   : > { %v2196_v33 = vpop.f32.mrf.mxu1 }
 0x12e   : > { %v978_v34 = vpop.f32.mrf.mxu0 }
 0x12f   : > { %v1124_v35 = vpop.f32.mrf.mxu1  ;;  %v1009_v60 = vadd.f32 %v978_v34, %v861_v2 }
 0x130   : > { %v2173_v39 = vpop.f32.mrf.mxu0 }
 0x131   : > { %v2883_v40 = vpop.f32.mrf.mxu1  ;;  %v1155_v29 = vadd.f32 %v1124_v35, %v1009_v60 }
 0x132   : > { %2933 = vst [vmem:[#allocation3_spill] sm:$0xff] %v2883_v40  ;;  %v981_v43 = vpop.f32.mrf.mxu0 }
 0x133   : > { %v2885_v45 = vpop.f32.mrf.mxu1  ;;  %v1010_v30 = vadd.f32 %v981_v43, %v862_v12 }
 0x134   : > { %2934 = vst [vmem:[#allocation4_spill] sm:$0xff] %v2885_v45  ;;  %v2176_v46 = vpop.f32.mrf.mxu0  ;;  %v723_v45 = vadd.f32 %v704_v57, %v538_v3 }
 0x135   : > { %v2200_v37 = vpop.f32.mrf.mxu1  ;;  %v1015_v13 = vadd.f32 %v2176_v46, %v867_v16 }
 0x136   : > { %v994_v59 = vpop.f32.mrf.mxu0  ;;  %v865_v56 = vadd.f32 %v846_v26, %v723_v45 }
 0x137   : > { %v1140_v38 = vpop.f32.mrf.mxu1  ;;  %v1161_v44 = vadd.f32 %v2200_v37, %v1015_v13 }
 0x138   : > { %v2177_v63 = vpop.f32.mrf.mxu0 }
 0x139   : > { %v2201_v4 = vpop.f32.mrf.mxu1 }
 0x13a   : > { %v997_v50 = vpop.f32.mrf.mxu0 }
 0x13b   : > { %v2887_v51 = vpop.f32.mrf.mxu1 }
 0x13c   : > { %2935 = vst [vmem:[#allocation5_spill] sm:$0xff] %v2887_v51  ;;  %v549_v51 = vadd.f32 %v2105_v49, %v2081_v20  ;;  %v1013_v49 = vadd.f32 %v994_v59, %v865_v56 }
 0x13e   : > { %v726_v17 = vadd.f32 %v2129_v36, %v549_v51  ;;  %v1159_v26 = vadd.f32 %v1140_v38, %v1013_v49 }
 0x140   : > { %v868_v20 = vadd.f32 %v2153_v10, %v726_v17 }
 0x14c   : > { %v2220_v52 = vpop.f32.mrf.mxu0 }
 0x14d   : > { %v2244_v6 = vpop.f32.mrf.mxu1 }
 0x14e   : > { %v1263_v54 = vpop.f32.mrf.mxu0 }
 0x14f   : > { %v2889_v47 = vpop.f32.mrf.mxu1  ;;  %v1294_v10 = vadd.f32 %v1263_v54, %v1155_v29 }
 0x150   : > { %2936 = vst [vmem:[#allocation6_spill] sm:$0xff] %v2889_v47  ;;  %v2221_v42 = vpop.f32.mrf.mxu0  ;;  %v863_v47 = vadd.f32 %v2148_v25, %v721_v5 }
 0x151   : > { %v2891_v55 = vpop.f32.mrf.mxu1 }
 0x152   : > { %2937 = vst [vmem:[#allocation7_spill] sm:$0xff] %v2891_v55  ;;  %v1266_v62 = vpop.f32.mrf.mxu0  ;;  %v722_v55 = vadd.f32 %v2125_v18, %v533_v11  ;;  %v1011_v21 = vadd.f32 %v2172_v32, %v863_v47  ;;  %v1016_v18 = vadd.f32 %v2177_v63, %v868_v20  ;;  %v2942_v63 = vld [vmem:[#allocation5_spill] sm:$0xff] }
 0x153   : > { %v2893_v0 = vpop.f32.mrf.mxu1 }
 0x154   : > { %2938 = vst [vmem:[#allocation8_spill] sm:$0xff] %v2893_v0  ;;  %v2224_v40 = vpop.f32.mrf.mxu0  ;;  %v724_v0 = vadd.f32 %v707_v31, %v541_v58  ;;  %v864_v22 = vadd.f32 %v2149_v28, %v722_v55  ;;  %v1157_v24 = vadd.f32 %v2196_v33, %v1011_v21  ;;  %v2940_v31 = vld [vmem:[#allocation3_spill] sm:$0xff]  ;;  %v1162_v34 = vadd.f32 %v2201_v4, %v1016_v18  ;;  %v2941_v33 = vld [vmem:[#allocation4_spill] sm:$0xff] }
 0x155   : > { %v2248_v48 = vpop.f32.mrf.mxu1  ;;  %v1300_v28 = vadd.f32 %v2224_v40, %v1161_v44 }
 0x156   : > { %v1279_v19 = vpop.f32.mrf.mxu0  ;;  %v1012_v25 = vadd.f32 %v2173_v39, %v864_v22  ;;  %v866_v53 = vadd.f32 %v849_v27, %v724_v0  ;;  %v1296_v23 = vadd.f32 %v2220_v52, %v1157_v24  ;;  %v1156_v39 = vadd.f32 %v2941_v33, %v1010_v30 }
 0x157   : > { %v1424_v9 = vpop.f32.mrf.mxu1  ;;  %v1298_v45 = vadd.f32 %v1279_v19, %v1159_v26  ;;  %v1445_v43 = vadd.f32 %v2248_v48, %v1300_v28  ;;  %v2943_v38 = vld [vmem:[#allocation6_spill] sm:$0xff] }
 0x158   : > { %v2225_v15 = vpop.f32.mrf.mxu0  ;;  %v1014_v36 = vadd.f32 %v997_v50, %v866_v53  ;;  %v1158_v32 = vadd.f32 %v2940_v31, %v1012_v25  ;;  %v1441_v27 = vadd.f32 %v2244_v6, %v1296_v23  ;;  %v1439_v4 = vadd.f32 %v2943_v38, %v1294_v10 }
 0x159   : > { %v2249_v57 = vpop.f32.mrf.mxu1  ;;  %v1301_v51 = vadd.f32 %v2225_v15, %v1162_v34  ;;  %v1295_v50 = vadd.f32 %v1266_v62, %v1156_v39  ;;  %v1443_v54 = vadd.f32 %v1424_v9, %v1298_v45  ;;  %v2944_v61 = vld [vmem:[#allocation7_spill] sm:$0xff] }
 0x15a   : > { %v1282_v46 = vpop.f32.mrf.mxu0  ;;  %v1297_v37 = vadd.f32 %v2221_v42, %v1158_v32  ;;  %v1160_v35 = vadd.f32 %v2942_v63, %v1014_v36 }
 0x15b   : > { %v1427_v59 = vpop.f32.mrf.mxu1  ;;  %v1446_v3 = vadd.f32 %v2249_v57, %v1301_v51  ;;  %v2945_v11 = vld [vmem:[#allocation8_spill] sm:$0xff] }
 0x15c   : > { %v1299_v47 = vadd.f32 %v1282_v46, %v1160_v35  ;;  %v1442_v1 = vadd.f32 %v2944_v61, %v1297_v37  ;;  %v1440_v41 = vadd.f32 %v2945_v11, %v1295_v50 }
 0x15e   : > { %v1444_v16 = vadd.f32 %v1427_v59, %v1299_v47 }
 0x16c   : > { %v2268_v40 = vpop.f32.mrf.mxu0 }
 0x16d   : > { %v1584_v52 = vadd.f32 %v2268_v40, %v1441_v27  ;;  %v2272_v6 = vpop.f32.mrf.mxu1 }
 0x16e   : > { %v1588_v42 = vadd.f32 %v2272_v6, %v1445_v43  ;;  %v1551_v55 = vpop.f32.mrf.mxu0 }
 0x16f   : > { %1592 = vst [vmem:[%s2903_s25 + $0x10] sm:$0xff] %v1584_v52  ;;  %v1582_v5 = vadd.f32 %v1551_v55, %v1439_v4  ;;  %v1567_v0 = vpop.f32.mrf.mxu1  ;;  %v1614_v60 = vmul.f32 %v1584_v52, %v1584_v52 }
 0x170   : > { %1596 = vst [vmem:[%s2903_s25 + $0x30] sm:$0xff] %v1588_v42  ;;  %v1586_v8 = vadd.f32 %v1567_v0, %v1443_v54  ;;  %v2269_v62 = vpop.f32.mrf.mxu0  ;;  %v1618_v29 = vmul.f32 %v1588_v42, %v1588_v42 }
 0x171   : > { %1590 = vst [vmem:[%s2903_s25] sm:$0xff] %v1582_v5  ;;  %v1585_v48 = vadd.f32 %v2269_v62, %v1442_v1  ;;  %v2273_v58 = vpop.f32.mrf.mxu1  ;;  %v1612_v13 = vmul.f32 %v1582_v5, %v1582_v5 }
 0x172   : > { %1594 = vst [vmem:[%s2903_s25 + $0x20] sm:$0xff] %v1586_v8  ;;  %v1589_v17 = vadd.f32 %v2273_v58, %v1446_v3  ;;  %v1554_v2 = vpop.f32.mrf.mxu0  ;;  %v1616_v24 = vmul.f32 %v1586_v8, %v1586_v8 }
 0x173   : > { %1593 = vst [vmem:[%s2903_s25 + $0x18] sm:$0xff] %v1585_v48  ;;  %v1583_v7 = vadd.f32 %v1554_v2, %v1440_v41  ;;  %v1570_v21 = vpop.f32.mrf.mxu1  ;;  %v1615_v49 = vmul.f32 %v1585_v48, %v1585_v48 }
 0x174   : > { %1597 = vst [vmem:[%s2903_s25 + $0x38] sm:$0xff] %v1589_v17  ;;  %v1587_v56 = vadd.f32 %v1570_v21, %v1444_v16  ;;  %v1619_v57 = vmul.f32 %v1589_v17, %v1589_v17 }
 0x175   : > { %1591 = vst [vmem:[%s2903_s25 + $0x8] sm:$0xff] %v1583_v7  ;;  %v1598_v19 = vadd.f32 %v1583_v7, %v1582_v5  ;;  %v1613_v22 = vmul.f32 %v1583_v7, %v1583_v7 }
 0x176   : > { %1595 = vst [vmem:[%s2903_s25 + $0x28] sm:$0xff] %v1587_v56  ;;  %v1617_v18 = vmul.f32 %v1587_v56, %v1587_v56 }
 0x177   : > { %v1599_v9 = vadd.f32 %v1598_v19, %v1584_v52  ;;  %v1620_v20 = vadd.f32 %v1613_v22, %v1612_v13 }
 0x179   : > { %v1621_v14 = vadd.f32 %v1620_v20, %v1614_v60  ;;  %v1600_v12 = vadd.f32 %v1599_v9, %v1585_v48 }
 0x17b   : > { %v1601_v25 = vadd.f32 %v1600_v12, %v1586_v8  ;;  %v1622_v53 = vadd.f32 %v1621_v14, %v1615_v49 }
 0x17d   : > { %v1602_v44 = vadd.f32 %v1601_v25, %v1587_v56  ;;  %v1623_v15 = vadd.f32 %v1622_v53, %v1616_v24 }
 0x17f   : > { %v1603_v30 = vadd.f32 %v1602_v44, %v1588_v42  ;;  %v1624_v23 = vadd.f32 %v1623_v15, %v1617_v18 }
 0x181   : > { %v1604_v26 = vadd.f32 %v1603_v30, %v1589_v17  ;;  %v1625_v36 = vadd.f32 %v1624_v23, %v1618_v29 }
 0x183   : > { %v1605_v28 = vrot.slane %v1604_v26, 4  ;;  %v1626_v31 = vadd.f32 %v1625_v36, %v1619_v57 }
 0x185   : > { %v1606_v32 = vadd.f32 %v1605_v28, %v1604_v26  ;;  %v1627_v10 = vrot.slane %v1626_v31, 4 }
 0x187   : > { %v1607_v34 = vrot.slane %v1606_v32, 2  ;;  %v1628_v45 = vadd.f32 %v1627_v10, %v1626_v31 }
 0x189   : > { %v1608_v46 = vadd.f32 %v1607_v34, %v1606_v32  ;;  %v1629_v33 = vrot.slane %v1628_v45, 2 }
 0x18b   : > { %v1609_v39 = vrot.slane %v1608_v46, 1  ;;  %v1630_v27 = vadd.f32 %v1629_v33, %v1628_v45 }
 0x18d   : > { %v1610_v37 = vadd.f32 %v1609_v39, %v1608_v46  ;;  %v1631_v59 = vrot.slane %v1630_v27, 1 }
 0x18f   : > { %1611 = vst [vmem:[%s211_s28] sm:$0x1] %v1610_v37  ;;  %v1632_v63 = vadd.f32 %v1631_v59, %v1630_v27 }
 0x191   : > { %1633 = vst [vmem:[%s214_s5] sm:$0x1] %v1632_v63 }
 0x192 PF: > { %s15_s15 = sadd.s32 1, %s2377_s15  }
 0x193   : > { %p12_p4 = scmp.ge.s32.totalorder %s15_s15, 4  }
 0x195   :  { %14 = sbr.rel (!%p12_p4) target bundleno = 1 (0x1), region = 90 }

// kernel: basic_block_forward.8
= control target key start
LH: loop header
LB: loop body
LE: loop exit
PB: predicated region body
PF: predicated region fallthrough
CT: control target
= control target key end

     0   :  { %s537_s15 = smov 0   ;;  %s568_s0 = inlined_call_operand.vmem [shape: f32[2,8,8,4], index: 0, kind: input, shape index: {}]   ;;  %s569_s1 = inlined_call_operand.vmem [shape: bf16[1,4,128], index: 1, kind: input, shape index: {}]   ;;  %s570_s2 = inlined_call_operand.vmem [shape: f32[2,64,128], index: 2, kind: output, shape index: {0}]   ;;  %s571_s3 = inlined_call_operand.vmem [shape: f32[2,1,128], index: 3, kind: output, shape index: {1}]   ;;  %s572_s4 = inlined_call_operand.vmem [shape: f32[2,1,128], index: 4, kind: output, shape index: {2}]  }
   0x1 LB: > { %s460_s16 = sadd.s32 4294967295, %s510_s15   ;;  %p464_p0 = scmp.ge.s32.totalorder %s510_s15, 1  ;;  %s510_s15 = sphi %s537_s15, %s15_s15  }
   0x2   : > { %p167_p1 = scmp.lt.s32.totalorder %s510_s15, 3 }
   0x4   : > { %p168_p2 = pnand %p464_p0, %p167_p1 }
   0x5   : > { %p199_p3 = scmp.lt.s32.totalorder (!%p168_p2), %s460_s16, 1 }
   0x6   : > { %171 = sbr.rel (%p168_p2) target bundleno = 246 (0xf6), region = 28 }
   0xb   : > { %v228_v0 = vld [vmem:[%s569_s1] sm:$0x3]  ;;  %vm242_vm0 = vcmask 1041408   ;;  %s574_s16 = smov (!%p199_p3, %s460_s16), 1  ;;  %vm229_vm1 = vcmask 31744  }
   0xc   : > { %494 = vmatprep.subr.msk.bf16.mxu0 %vm242_vm0, %v228_v0  ;;  %v244_v1 = vsel %vm242_vm0, %v228_v0, 0  ;;  %495 = vmatprep.subr.msk.bf16.mxu1 %vm242_vm0, %v228_v0  ;;  %s475_s19 = sshll.u32 %s574_s16, 6  ;;  %s211_s28 = scalar_lea.vmem %s571_s3, %s574_s16 }
   0xd   : > { %483 = vmatpush3.bf16.msra.mxu0 %v244_v1  ;;  %493 = vmatpush3.bf16.msra.mxu1 %v244_v1  ;;  %s203_s22 = scalar_lea.vmem %s568_s0, %s475_s19  ;;  %s208_s25 = scalar_lea.vmem %s570_s2, %s475_s19 }
   0xe   : > { %v216_v2 = vld [vmem:[%s203_s22] sm:$0xff]  ;;  %v217_v3 = vld [vmem:[%s203_s22 + $0x8] sm:$0xff]  ;;  %v218_v4 = vld [vmem:[%s203_s22 + $0x10] sm:$0xff]  ;;  %s214_s5 = scalar_lea.vmem %s572_s4, %s574_s16 }
   0xf   : > { %v224_v5 = vpack.c.bf16 %v217_v3, %v216_v2  ;;  %v219_v6 = vld [vmem:[%s203_s22 + $0x18] sm:$0xff]  ;;  %v220_v7 = vld [vmem:[%s203_s22 + $0x20] sm:$0xff]  ;;  %v221_v8 = vld [vmem:[%s203_s22 + $0x28] sm:$0xff] }
  0x10   : > { %v225_v9 = vpack.c.bf16 %v219_v6, %v218_v4  ;;  %v226_v10 = vpack.c.bf16 %v221_v8, %v220_v7  ;;  %v222_v11 = vld [vmem:[%s203_s22 + $0x30] sm:$0xff]  ;;  %v223_v12 = vld [vmem:[%s203_s22 + $0x38] sm:$0xff] }
  0x11   : > { %484 = vmatprep.mubr.msk.bf16.mxu0 %vm229_vm1, %v224_v5  ;;  %v227_v13 = vpack.c.bf16 %v223_v12, %v222_v11 }
  0x12   : > { %485 = vmatmul.mubr.msk.bf16.vlgmr.msra.gmra.mxu0 %vm229_vm1, %v225_v9  ;;  %488 = vmatprep.mubr.msk.bf16.mxu1 %vm229_vm1, %v226_v10 }
  0x13   : > { %489 = vmatmul.mubr.msk.bf16.vlgmr.msra.gmra.mxu1 %vm229_vm1, %v227_v13 }
  0xd2   : > { %v486_v14 = vpop.f32.mrf.mxu0 }
  0xd3   : > { %313 = vst [vmem:[%s208_s25 + $0x10] sm:$0xff] %v486_v14  ;;  %v490_v15 = vpop.f32.mrf.mxu1  ;;  %v335_v25 = vmul.f32 %v486_v14, %v486_v14 }
  0xd4   : > { %v280_v16 = vpop.f32.mrf.mxu0  ;;  %317 = vst [vmem:[%s208_s25 + $0x30] sm:$0xff] %v490_v15  ;;  %v339_v37 = vmul.f32 %v490_v15, %v490_v15 }
  0xd5   : > { %311 = vst [vmem:[%s208_s25] sm:$0xff] %v280_v16  ;;  %v296_v17 = vpop.f32.mrf.mxu1  ;;  %v333_v21 = vmul.f32 %v280_v16, %v280_v16 }
  0xd6   : > { %v487_v18 = vpop.f32.mrf.mxu0  ;;  %315 = vst [vmem:[%s208_s25 + $0x20] sm:$0xff] %v296_v17  ;;  %v337_v31 = vmul.f32 %v296_v17, %v296_v17 }
  0xd7   : > { %314 = vst [vmem:[%s208_s25 + $0x18] sm:$0xff] %v487_v18  ;;  %v491_v19 = vpop.f32.mrf.mxu1  ;;  %v336_v28 = vmul.f32 %v487_v18, %v487_v18 }
  0xd8   : > { %v283_v20 = vpop.f32.mrf.mxu0  ;;  %318 = vst [vmem:[%s208_s25 + $0x38] sm:$0xff] %v491_v19  ;;  %v340_v40 = vmul.f32 %v491_v19, %v491_v19 }
  0xd9   : > { %312 = vst [vmem:[%s208_s25 + $0x8] sm:$0xff] %v283_v20  ;;  %v319_v22 = vadd.f32 %v283_v20, %v280_v16  ;;  %v334_v23 = vmul.f32 %v283_v20, %v283_v20  ;;  %v299_v24 = vpop.f32.mrf.mxu1 }
  0xda   : > { %316 = vst [vmem:[%s208_s25 + $0x28] sm:$0xff] %v299_v24  ;;  %v338_v35 = vmul.f32 %v299_v24, %v299_v24 }
  0xdb   : > { %v320_v26 = vadd.f32 %v486_v14, %v319_v22  ;;  %v341_v27 = vadd.f32 %v334_v23, %v333_v21 }
  0xdd   : > { %v342_v29 = vadd.f32 %v341_v27, %v335_v25  ;;  %v321_v30 = vadd.f32 %v487_v18, %v320_v26 }
  0xdf   : > { %v322_v32 = vadd.f32 %v321_v30, %v296_v17  ;;  %v343_v33 = vadd.f32 %v342_v29, %v336_v28 }
  0xe1   : > { %v323_v34 = vadd.f32 %v322_v32, %v299_v24  ;;  %v344_v36 = vadd.f32 %v343_v33, %v337_v31 }
  0xe3   : > { %v324_v38 = vadd.f32 %v490_v15, %v323_v34  ;;  %v345_v39 = vadd.f32 %v344_v36, %v338_v35 }
  0xe5   : > { %v325_v41 = vadd.f32 %v491_v19, %v324_v38  ;;  %v346_v42 = vadd.f32 %v345_v39, %v339_v37 }
  0xe7   : > { %v326_v43 = vrot.slane %v325_v41, 4  ;;  %v347_v44 = vadd.f32 %v346_v42, %v340_v40 }
  0xe9   : > { %v327_v45 = vadd.f32 %v326_v43, %v325_v41  ;;  %v348_v46 = vrot.slane %v347_v44, 4 }
  0xeb   : > { %v328_v47 = vrot.slane %v327_v45, 2  ;;  %v349_v48 = vadd.f32 %v348_v46, %v347_v44 }
  0xed   : > { %v329_v49 = vadd.f32 %v328_v47, %v327_v45  ;;  %v350_v50 = vrot.slane %v349_v48, 2 }
  0xef   : > { %v330_v51 = vrot.slane %v329_v49, 1  ;;  %v351_v52 = vadd.f32 %v350_v50, %v349_v48 }
  0xf1   : > { %v331_v53 = vadd.f32 %v330_v51, %v329_v49  ;;  %v352_v54 = vrot.slane %v351_v52, 1 }
  0xf3   : > { %332 = vst [vmem:[%s211_s28] sm:$0x1] %v331_v53  ;;  %v353_v55 = vadd.f32 %v352_v54, %v351_v52 }
  0xf5   : > { %354 = vst [vmem:[%s214_s5] sm:$0x1] %v353_v55 }
  0xf6 PF: > { %s15_s15 = sadd.s32 1, %s510_s15  }
  0xf7   : > { %p12_p4 = scmp.ge.s32.totalorder %s15_s15, 4  }
  0xf9   :  { %14 = sbr.rel (!%p12_p4) target bundleno = 1 (0x1), region = 82 }

// kernel: basic_block_forward.9
= control target key start
LH: loop header
LB: loop body
LE: loop exit
PB: predicated region body
PF: predicated region fallthrough
CT: control target
= control target key end

     0   :  { %s466_s0 = inlined_call_operand.vmem [shape: f32[128,128], index: 0, kind: input, shape index: {}]   ;;  %s467_s1 = inlined_call_operand.vmem [shape: f32[1,128], index: 1, kind: input, shape index: {}]   ;;  %s468_s2 = inlined_call_operand.vmem [shape: f32[1,128], index: 2, kind: input, shape index: {}]   ;;  %s469_s3 = inlined_call_operand.vmem [shape: f32[128,128], index: 3, kind: input, shape index: {}]   ;;  %s470_s4 = inlined_call_operand.vmem [shape: f32[1,128], index: 4, kind: input, shape index: {}]   ;;  %s471_s5 = inlined_call_operand.vmem [shape: f32[1,128], index: 5, kind: input, shape index: {}]   ;;  %s472_s6 = inlined_call_operand.vmem [shape: f32[128,128], index: 6, kind: output, shape index: {}]  }
   0x1   :  { %v23_v0 = vld [vmem:[%s466_s0] sm:$0xff]  ;;  %v24_v8 = vld [vmem:[%s466_s0 + $0x8] sm:$0xff]  ;;  %v25_v10 = vld [vmem:[%s466_s0 + $0x10] sm:$0xff] }
   0x2   :  { %v244_v1 = vld [vmem:[%s467_s1] ss:$0 sm:$0xff]  ;;  %v86_v9 = vld [vmem:[%s469_s3 + $0x8] sm:$0xff]  ;;  %v87_v15 = vld [vmem:[%s469_s3 + $0x10] sm:$0xff] }
   0x3   :  { %v249_v2 = vld [vmem:[%s468_s2] ss:$0 sm:$0xff]  ;;  %v46_v3 = vmul.f32 %v244_v1, %v23_v0  ;;  %v47_v12 = vmul.f32 %v244_v1, %v24_v8  ;;  %v48_v14 = vmul.f32 %v244_v1, %v25_v10  ;;  %v26_v16 = vld [vmem:[%s466_s0 + $0x18] sm:$0xff]  ;;  %v28_v23 = vld [vmem:[%s466_s0 + $0x28] sm:$0xff] }
   0x4   :  { %v85_v4 = vld [vmem:[%s469_s3] sm:$0xff]  ;;  %v88_v17 = vld [vmem:[%s469_s3 + $0x18] sm:$0xff]  ;;  %v49_v19 = vmul.f32 %v244_v1, %v26_v16  ;;  %v90_v28 = vld [vmem:[%s469_s3 + $0x28] sm:$0xff]  ;;  %v51_v33 = vmul.f32 %v244_v1, %v28_v23 }
   0x5   :  { %v258_v5 = vld [vmem:[%s470_s4] ss:$0 sm:$0xff]  ;;  %v69_v11 = vadd.f32 %v249_v2, %v46_v3  ;;  %v70_v25 = vadd.f32 %v249_v2, %v47_v12  ;;  %v71_v26 = vadd.f32 %v249_v2, %v48_v14  ;;  %v29_v29 = vld [vmem:[%s466_s0 + $0x30] sm:$0xff]  ;;  %v30_v39 = vld [vmem:[%s466_s0 + $0x38] sm:$0xff] }
   0x6   :  { %v108_v6 = vmul.f32 %v258_v5, %v85_v4  ;;  %v264_v7 = vld [vmem:[%s471_s5] ss:$0 sm:$0xff]  ;;  %v109_v13 = vmul.f32 %v258_v5, %v86_v9  ;;  %v110_v18 = vmul.f32 %v258_v5, %v87_v15  ;;  %v111_v20 = vmul.f32 %v258_v5, %v88_v17  ;;  %v91_v30 = vld [vmem:[%s469_s3 + $0x30] sm:$0xff]  ;;  %v92_v44 = vld [vmem:[%s469_s3 + $0x38] sm:$0xff] }
   0x7   :  { %v27_v21 = vld [vmem:[%s466_s0 + $0x20] sm:$0xff]  ;;  %v72_v31 = vadd.f32 %v249_v2, %v49_v19  ;;  %v113_v34 = vmul.f32 %v258_v5, %v90_v28  ;;  %v74_v41 = vadd.f32 %v249_v2, %v51_v33  ;;  %v52_v42 = vmul.f32 %v244_v1, %v29_v29  ;;  %v32_v55 = vld [vmem:[%s466_s0 + $0x48] sm:$0xff]  ;;  %v33_v3 = vld [vmem:[%s466_s0 + $0x50] sm:$0xff] }
   0x8   :  { %v89_v22 = vld [vmem:[%s469_s3 + $0x20] sm:$0xff]  ;;  %v124_v24 = vadd.f32 %v108_v6, %v69_v11  ;;  %v50_v27 = vmul.f32 %v244_v1, %v27_v21  ;;  %v125_v36 = vadd.f32 %v109_v13, %v70_v25  ;;  %v126_v37 = vadd.f32 %v110_v18, %v71_v26  ;;  %v94_v60 = vld [vmem:[%s469_s3 + $0x48] sm:$0xff]  ;;  %v95_v4 = vld [vmem:[%s469_s3 + $0x50] sm:$0xff] }
   0x9   :  { %v112_v32 = vmul.f32 %v258_v5, %v89_v22  ;;  %v127_v40 = vadd.f32 %v111_v20, %v72_v31  ;;  %v114_v43 = vmul.f32 %v258_v5, %v91_v30  ;;  %v129_v50 = vadd.f32 %v113_v34, %v74_v41  ;;  %v31_v53 = vld [vmem:[%s466_s0 + $0x40] sm:$0xff]  ;;  %v34_v11 = vld [vmem:[%s466_s0 + $0x58] sm:$0xff]  ;;  %v36_v23 = vld [vmem:[%s466_s0 + $0x68] sm:$0xff] }
   0xa   :  { %v147_v35 = vadd.f32 %v264_v7, %v124_v24  ;;  %v73_v38 = vadd.f32 %v249_v2, %v50_v27  ;;  %v148_v46 = vadd.f32 %v264_v7, %v125_v36  ;;  %v149_v47 = vadd.f32 %v264_v7, %v126_v37  ;;  %v93_v54 = vld [vmem:[%s469_s3 + $0x40] sm:$0xff]  ;;  %v96_v12 = vld [vmem:[%s469_s3 + $0x58] sm:$0xff]  ;;  %v37_v33 = vld [vmem:[%s466_s0 + $0x70] sm:$0xff] }
   0xb   :  { %v150_v49 = vadd.f32 %v264_v7, %v127_v40  ;;  %v75_v51 = vadd.f32 %v249_v2, %v52_v42  ;;  %v53_v52 = vmul.f32 %v244_v1, %v30_v39  ;;  %v115_v59 = vmul.f32 %v258_v5, %v92_v44  ;;  %v35_v17 = vld [vmem:[%s466_s0 + $0x60] sm:$0xff]  ;;  %v99_v42 = vld [vmem:[%s469_s3 + $0x70] sm:$0xff] }
   0xc   :  { %v163_v45 = vmax.f32 %v147_v35, 0.0  ;;  %v128_v48 = vadd.f32 %v112_v32, %v73_v38  ;;  %v164_v56 = vmax.f32 %v148_v46, 0.0  ;;  %v165_v57 = vmax.f32 %v149_v47, 0.0  ;;  %v97_v22 = vld [vmem:[%s469_s3 + $0x60] sm:$0xff]  ;;  %v98_v32 = vld [vmem:[%s469_s3 + $0x68] sm:$0xff]  ;;  %v38_v47 = vld [vmem:[%s466_s0 + $0x78] sm:$0xff] }
   0xd   :  { %v166_v61 = vmax.f32 %v150_v49, 0.0  ;;  %v152_v62 = vadd.f32 %v264_v7, %v129_v50  ;;  %v130_v63 = vadd.f32 %v114_v43, %v75_v51  ;;  %v76_v0 = vadd.f32 %v249_v2, %v53_v52 }
   0xe   :  { %179 = vst [vmem:[%s472_s6] sm:$0xff] %v163_v45  ;;  %v151_v58 = vadd.f32 %v264_v7, %v128_v48  ;;  %180 = vst [vmem:[%s472_s6 + $0x8] sm:$0xff] %v164_v56  ;;  %v54_v8 = vmul.f32 %v244_v1, %v31_v53  ;;  %v116_v9 = vmul.f32 %v258_v5, %v93_v54  ;;  %v100_v48 = vld [vmem:[%s469_s3 + $0x78] sm:$0xff] }
   0xf   :  { %181 = vst [vmem:[%s472_s6 + $0x10] sm:$0xff] %v165_v57  ;;  %v55_v10 = vmul.f32 %v244_v1, %v32_v55  ;;  %182 = vst [vmem:[%s472_s6 + $0x18] sm:$0xff] %v166_v61  ;;  %v168_v13 = vmax.f32 %v152_v62, 0.0  ;;  %v153_v14 = vadd.f32 %v264_v7, %v130_v63  ;;  %v131_v15 = vadd.f32 %v115_v59, %v76_v0 }
  0x10   :  { %v167_v6 = vmax.f32 %v151_v58, 0.0  ;;  %v117_v16 = vmul.f32 %v258_v5, %v94_v60  ;;  %v77_v18 = vadd.f32 %v249_v2, %v54_v8  ;;  %v56_v20 = vmul.f32 %v244_v1, %v33_v3 }
  0x11   :  { %v78_v19 = vadd.f32 %v249_v2, %v55_v10  ;;  %v118_v21 = vmul.f32 %v258_v5, %v95_v4  ;;  %184 = vst [vmem:[%s472_s6 + $0x28] sm:$0xff] %v168_v13  ;;  %v169_v24 = vmax.f32 %v153_v14, 0.0  ;;  %v154_v25 = vadd.f32 %v264_v7, %v131_v15 }
  0x12   :  { %183 = vst [vmem:[%s472_s6 + $0x20] sm:$0xff] %v167_v6  ;;  %v57_v26 = vmul.f32 %v244_v1, %v34_v11  ;;  %v119_v27 = vmul.f32 %v258_v5, %v96_v12  ;;  %v132_v28 = vadd.f32 %v116_v9, %v77_v18  ;;  %v79_v30 = vadd.f32 %v249_v2, %v56_v20 }
  0x13   :  { %v133_v29 = vadd.f32 %v117_v16, %v78_v19  ;;  %v58_v31 = vmul.f32 %v244_v1, %v35_v17  ;;  %185 = vst [vmem:[%s472_s6 + $0x30] sm:$0xff] %v169_v24  ;;  %v170_v34 = vmax.f32 %v154_v25, 0.0  ;;  %v120_v36 = vmul.f32 %v258_v5, %v97_v22 }
  0x14   :  { %v80_v35 = vadd.f32 %v249_v2, %v57_v26  ;;  %v59_v37 = vmul.f32 %v244_v1, %v36_v23  ;;  %v155_v38 = vadd.f32 %v264_v7, %v132_v28  ;;  %v134_v40 = vadd.f32 %v118_v21, %v79_v30 }
  0x15   :  { %v156_v39 = vadd.f32 %v264_v7, %v133_v29  ;;  %v81_v41 = vadd.f32 %v249_v2, %v58_v31  ;;  %186 = vst [vmem:[%s472_s6 + $0x38] sm:$0xff] %v170_v34  ;;  %v121_v45 = vmul.f32 %v258_v5, %v98_v32  ;;  %v60_v46 = vmul.f32 %v244_v1, %v37_v33 }
  0x16   :  { %v135_v43 = vadd.f32 %v119_v27, %v80_v35  ;;  %v82_v44 = vadd.f32 %v249_v2, %v59_v37  ;;  %v171_v49 = vmax.f32 %v155_v38, 0.0  ;;  %v157_v51 = vadd.f32 %v264_v7, %v134_v40 }
  0x17   :  { %v172_v50 = vmax.f32 %v156_v39, 0.0  ;;  %v136_v52 = vadd.f32 %v120_v36, %v81_v41  ;;  %v83_v55 = vadd.f32 %v249_v2, %v60_v46  ;;  %v122_v56 = vmul.f32 %v258_v5, %v99_v42 }
  0x18   :  { %v158_v53 = vadd.f32 %v264_v7, %v135_v43  ;;  %v137_v54 = vadd.f32 %v121_v45, %v82_v44  ;;  %187 = vst [vmem:[%s472_s6 + $0x40] sm:$0xff] %v171_v49  ;;  %v173_v57 = vmax.f32 %v157_v51, 0.0  ;;  %v61_v59 = vmul.f32 %v244_v1, %v38_v47 }
  0x19   :  { %188 = vst [vmem:[%s472_s6 + $0x48] sm:$0xff] %v172_v50  ;;  %v159_v58 = vadd.f32 %v264_v7, %v136_v52  ;;  %v123_v60 = vmul.f32 %v258_v5, %v100_v48  ;;  %v138_v63 = vadd.f32 %v122_v56, %v83_v55 }
  0x1a   :  { %v174_v61 = vmax.f32 %v158_v53, 0.0  ;;  %v160_v62 = vadd.f32 %v264_v7, %v137_v54  ;;  %189 = vst [vmem:[%s472_s6 + $0x50] sm:$0xff] %v173_v57  ;;  %v84_v3 = vadd.f32 %v249_v2, %v61_v59 }
  0x1b   :  { %v175_v0 = vmax.f32 %v159_v58, 0.0  ;;  %v161_v1 = vadd.f32 %v264_v7, %v138_v63 }
  0x1c   :  { %190 = vst [vmem:[%s472_s6 + $0x58] sm:$0xff] %v174_v61  ;;  %v176_v4 = vmax.f32 %v160_v62, 0.0  ;;  %v139_v5 = vadd.f32 %v123_v60, %v84_v3 }
  0x1d   :  { %191 = vst [vmem:[%s472_s6 + $0x60] sm:$0xff] %v175_v0  ;;  %v177_v6 = vmax.f32 %v161_v1, 0.0 }
  0x1e   :  { %192 = vst [vmem:[%s472_s6 + $0x68] sm:$0xff] %v176_v4  ;;  %v162_v8 = vadd.f32 %v264_v7, %v139_v5 }
  0x1f   :  { %193 = vst [vmem:[%s472_s6 + $0x70] sm:$0xff] %v177_v6 }
  0x20   :  { %v178_v2 = vmax.f32 %v162_v8, 0.0 }
  0x22   :  { %194 = vst [vmem:[%s472_s6 + $0x78] sm:$0xff] %v178_v2 }

</bundles_post_ra>
